<compile_context>
chip_gen: v7x
topology: tpu7x:2x2x1
jax: 0.10.0
libtpu: 0.0.40
codegen_flags: <defaults>
</compile_context>

<pallas_src>
import functools

import jax
import jax.numpy as jnp
from jax.experimental import pallas as pl
from jax.experimental.pallas import tpu as pltpu

EPS = 1e-5                       # nn.BatchNorm2d default eps
LANE = 128
VMEM_LIMIT = 48 * 1024 * 1024    # safe on v5e/v6e (128 MiB phys) and v7x (64 MiB phys)
TM_MAX = 512                     # M-tile rows


def _rup(n, m):
    return ((n + m - 1) // m) * m


def _pad2(a, rows, cols):
    return jnp.pad(a, ((0, rows - a.shape[0]), (0, cols - a.shape[1])))


# ------------------------------------------------------------ pass 1 kernel
def _conv_stats_kernel(p_ref, w_ref, y_ref, sum_ref, sq_ref):
    """Conv matmul (bf16 x bf16 -> f32 acc) + per-tile channel sum / sumsq."""
    y = jnp.dot(p_ref[...], w_ref[...], preferred_element_type=jnp.float32)
    y_ref[...] = y.astype(y_ref.dtype)                       # bf16 round trip
    sum_ref[0] = jnp.sum(y, axis=0, keepdims=True)           # (1, C) partial
    sq_ref[0] = jnp.sum(y * y, axis=0, keepdims=True)


def _conv_stats(patches, w_mat, tm):
    mp, kp = patches.shape
    cpw = w_mat.shape[1]
    gm = mp // tm
    y, psum, psq = pl.pallas_call(
        _conv_stats_kernel,
        out_shape=(jax.ShapeDtypeStruct((mp, cpw), jnp.bfloat16),
                   jax.ShapeDtypeStruct((gm, 1, cpw), jnp.float32),
                   jax.ShapeDtypeStruct((gm, 1, cpw), jnp.float32)),
        grid_spec=pltpu.PrefetchScalarGridSpec(
            num_scalar_prefetch=0,
            grid=(gm,),
            in_specs=[pl.BlockSpec((tm, kp), lambda i: (i, 0)),
                      pl.BlockSpec((kp, cpw), lambda i: (0, 0))],
            out_specs=[pl.BlockSpec((tm, cpw), lambda i: (i, 0)),
                       pl.BlockSpec((1, 1, cpw), lambda i: (i, 0, 0)),
                       pl.BlockSpec((1, 1, cpw), lambda i: (i, 0, 0))]),
        compiler_params=pltpu.CompilerParams(
            dimension_semantics=("parallel",),      # per-tile stats -> megacore OK
            vmem_limit_bytes=VMEM_LIMIT),
    )(patches, w_mat)
    return y, jnp.sum(psum, axis=0), jnp.sum(psq, axis=0)     # (1, cpw) each


def _bn_fold(ssum, ssq, gamma_p, beta_p, m_valid):
    """Fold training-mode BN (batch mean/var) into scale/shift vectors."""
    mean = ssum / float(m_valid)
    var = jnp.maximum(ssq / float(m_valid) - mean * mean, 0.0)
    scale = gamma_p * jax.lax.rsqrt(var + EPS)
    shift = beta_p - mean * scale
    return scale, shift


# ------------------------------------------------------------ pass 2 kernels
def _bn_relu_kernel(y_ref, scale_ref, shift_ref, o_ref):
    y = y_ref[...].astype(jnp.float32) * scale_ref[...] + shift_ref[...]
    o_ref[...] = jnp.maximum(y, 0.0).astype(o_ref.dtype)


def _bn_relu(y, scale, shift, tm, cp, out_dtype=jnp.bfloat16):
    mp = y.shape[0]
    return pl.pallas_call(
        _bn_relu_kernel,
        out_shape=jax.ShapeDtypeStruct((mp, cp), out_dtype),
        grid_spec=pltpu.PrefetchScalarGridSpec(
            num_scalar_prefetch=0,
            grid=(mp // tm,),
            in_specs=[pl.BlockSpec((tm, cp), lambda i: (i, 0)),
                      pl.BlockSpec((1, cp), lambda i: (0, 0)),
                      pl.BlockSpec((1, cp), lambda i: (0, 0))],
            out_specs=pl.BlockSpec((tm, cp), lambda i: (i, 0))),
        compiler_params=pltpu.CompilerParams(
            dimension_semantics=("parallel",),
            vmem_limit_bytes=VMEM_LIMIT),
    )(y, scale, shift)


def _make_final_kernel(shortcut_bn):
    if shortcut_bn:
        def kernel(y_ref, s_ref, b_ref, sc_ref, scs_ref, scb_ref, o_ref):
            h = jnp.maximum(
                y_ref[...].astype(jnp.float32) * s_ref[...] + b_ref[...], 0.0)
            sc = sc_ref[...].astype(jnp.float32) * scs_ref[...] + scb_ref[...]
            o_ref[...] = jnp.maximum(h + sc, 0.0).astype(o_ref.dtype)
    else:
        def kernel(y_ref, s_ref, b_ref, sc_ref, o_ref):
            h = jnp.maximum(
                y_ref[...].astype(jnp.float32) * s_ref[...] + b_ref[...], 0.0)
            o_ref[...] = jnp.maximum(
                h + sc_ref[...].astype(jnp.float32), 0.0).astype(o_ref.dtype)
    return kernel


def _col_block_map(cb):
    def index_map(i):
        return (i, cb)
    return index_map


def _bn_relu_add_relu(y, scale, shift, sc, tm, cp, sc_scale=None, sc_shift=None,
                      sc_col_block=0, out_dtype=jnp.float32):
    """relu( relu(y*scale+shift) + [sc*sc_scale+sc_shift | sc] )."""
    mp = y.shape[0]
    shortcut_bn = sc_scale is not None
    inputs = [y, scale, shift, sc]
    in_specs = [pl.BlockSpec((tm, cp), lambda i: (i, 0)),
                pl.BlockSpec((1, cp), lambda i: (0, 0)),
                pl.BlockSpec((1, cp), lambda i: (0, 0)),
                pl.BlockSpec((tm, cp), _col_block_map(sc_col_block))]
    if shortcut_bn:
        inputs += [sc_scale, sc_shift]
        in_specs += [pl.BlockSpec((1, cp), lambda i: (0, 0)),
                     pl.BlockSpec((1, cp), lambda i: (0, 0))]
    return pl.pallas_call(
        _make_final_kernel(shortcut_bn),
        out_shape=jax.ShapeDtypeStruct((mp, cp), out_dtype),
        grid_spec=pltpu.PrefetchScalarGridSpec(
            num_scalar_prefetch=0,
            grid=(mp // tm,),
            in_specs=in_specs,
            out_specs=pl.BlockSpec((tm, cp), lambda i: (i, 0))),
        compiler_params=pltpu.CompilerParams(
            dimension_semantics=("parallel",),
            vmem_limit_bytes=VMEM_LIMIT),
    )(*inputs)


# ---------------------------------------------------------------- glue (JAX)
def _im2col(x_nhwc, kh, kw, stride, pad):
    """(N,H,W,C) -> (N*Ho*Wo, kh*kw*C); column order = (tap-major, channel-minor).

    TODO(synk): move the tap handling into the conv kernel (tap axis in the
    grid / halo reads via pl.ds) to eliminate this 9x HBM expansion.
    """
    N, H, W, C = x_nhwc.shape
    xp = jnp.pad(x_nhwc, ((0, 0), (pad, pad), (pad, pad), (0, 0)))
    Ho = (H + 2 * pad - kh) // stride + 1
    Wo = (W + 2 * pad - kw) // stride + 1
    taps = []
    for dy in range(kh):
        for dx in range(kw):
            taps.append(xp[:, dy:dy + (Ho - 1) * stride + 1:stride,
                              dx:dx + (Wo - 1) * stride + 1:stride, :])
    patches = jnp.stack(taps, axis=3)             # (N, Ho, Wo, kh*kw, C)
    return patches.reshape(N * Ho * Wo, kh * kw * C), Ho, Wo


def _w_oihw_to_mat(w_oihw):
    """PyTorch (Cout, Cin, kh, kw) -> ((kh*kw*Cin), Cout) matching _im2col order."""
    co, ci, kh, kw = w_oihw.shape
    return jnp.transpose(w_oihw, (2, 3, 1, 0)).reshape(kh * kw * ci, co)


def pack_params(params, downsample):
    """One-time packing: weights -> padded bf16 matrices; gamma/beta -> padded f32.

    * Conv biases are intentionally NOT packed: training-mode BN subtracts the
      batch mean, which cancels them exactly.
    * Downsample: the 1x1 stride-2 shortcut conv is embedded as the centre tap
      of a zero 3x3 kernel (same sampling positions as conv1's centre tap with
      stride 2 / pad 1) and concatenated along output channels, so conv1's
      single MXU pass computes both branches.
    """
    def pad_w(m):
        return _pad2(m, _rup(m.shape[0], LANE),
                     _rup(m.shape[1], LANE)).astype(jnp.bfloat16)

    def pad_v(v):
        return _pad2(v.astype(jnp.float32), 1, _rup(v.shape[1], LANE))

    packed = {
        "g1": pad_v(params["g1"]), "beta1": pad_v(params["beta1"]),
        "w2": pad_w(_w_oihw_to_mat(params["w2"])),
        "g2": pad_v(params["g2"]), "beta2": pad_v(params["beta2"]),
    }
    w1m = pad_w(_w_oihw_to_mat(params["w1"]))
    if downsample:
        co, ci = params["w_sc"].shape[:2]
        w_sc3 = jnp.zeros((co, ci, 3, 3), jnp.float32)
        w_sc3 = w_sc3.at[:, :, 1, 1].set(params["w_sc"][:, :, 0, 0])
        packed["w1"] = jnp.concatenate([w1m, pad_w(_w_oihw_to_mat(w_sc3))], axis=1)
        packed["g_sc"] = pad_v(params["g_sc"])
        packed["beta_sc"] = pad_v(params["beta_sc"])
    else:
        packed["w1"] = w1m
    return packed


def resblock_forward_nhwc(x, packed, *, downsample, cout, tm_max=TM_MAX):
    """NHWC core (keep activations NHWC across blocks; transpose only at boundary)."""
    N, H, W, cin = x.shape
    stride1 = 2 if downsample else 1
    Ho = (H + 2 - 3) // stride1 + 1
    Wo = (W + 2 - 3) // stride1 + 1
    M = N * Ho * Wo
    cp = _rup(cout, LANE)
    tm = min(tm_max, _rup(M, 8))
    mp = _rup(M, tm)

    x_bf = x.astype(jnp.bfloat16)             # MXU operands bf16, f32 accumulation

    # ---- conv1 (+ fused 1x1 stride-2 shortcut conv when downsampling): one pass
    p1, _, _ = _im2col(x_bf, 3, 3, stride1, 1)
    p1 = _pad2(p1, mp, _rup(p1.shape[1], LANE))
    y1, ssum1, ssq1 = _conv_stats(p1, packed["w1"], tm)        # y1: (mp, cp | 2cp) bf16

    scale1, shift1 = _bn_fold(ssum1[:, :cp], ssq1[:, :cp],
                              packed["g1"], packed["beta1"], M)

    if downsample:
        # raw shortcut-conv output rides in column block 1 of y1; its BN is
        # folded into the final fused kernel.
        sc = y1
        sc_scale, sc_shift = _bn_fold(ssum1[:, cp:], ssq1[:, cp:],
                                      packed["g_sc"], packed["beta_sc"], M)
        sc_col = 1
    else:
        assert cin == cout, "identity shortcut requires in_channels == out_channels"
        sc = _pad2(x_bf.reshape(M, cin), mp, cp)     # identity shortcut, bf16
        sc_scale = sc_shift = None
        sc_col = 0

    # ---- bn1 + relu  (h1 emitted in bf16 -> feeds conv2's matmul directly)
    h1 = _bn_relu(y1, scale1, shift1, tm, cp)

    # ---- conv2 matmul + stats
    h1_sp = h1[:M, :cout].reshape(N, Ho, Wo, cout)
    p2, _, _ = _im2col(h1_sp, 3, 3, 1, 1)
    p2 = _pad2(p2, mp, _rup(p2.shape[1], LANE))
    y2, ssum2, ssq2 = _conv_stats(p2, packed["w2"], tm)
    scale2, shift2 = _bn_fold(ssum2, ssq2, packed["g2"], packed["beta2"], M)

    # ---- bn2 + relu, THEN shortcut (BN'd if downsample) add + final relu
    out = _bn_relu_add_relu(y2, scale2, shift2, sc, tm, cp,
                            sc_scale=sc_scale, sc_shift=sc_shift,
                            sc_col_block=sc_col)
    return out[:M, :cout].reshape(N, Ho, Wo, cout)


@functools.partial(jax.jit, static_argnames=("downsample", "cout"))
def resblock_forward(x_nchw, packed, *, downsample, cout):
    x = jnp.transpose(x_nchw, (0, 2, 3, 1))                # NCHW -> NHWC (boundary only)
    out = resblock_forward_nhwc(x, packed, downsample=downsample, cout=cout)
    return jnp.transpose(out, (0, 3, 1, 2))                # NHWC -> NCHW


# ------------------------------------------------------- parameters / reference
def init_params(key, cin, cout, downsample):
    ks = jax.random.split(key, 12)

    def conv_w(k, co, ci, kh, kw):
        fan_in = ci * kh * kw
        return jax.random.normal(k, (co, ci, kh, kw), jnp.float32) / jnp.sqrt(fan_in)

    p = {
        "w1": conv_w(ks[0], cout, cin, 3, 3),
        "b1": 0.1 * jax.random.normal(ks[1], (1, cout), jnp.float32),
        "w2": conv_w(ks[2], cout, cout, 3, 3),
        "b2": 0.1 * jax.random.normal(ks[3], (1, cout), jnp.float32),
        "g1": 1.0 + 0.1 * jax.random.normal(ks[4], (1, cout), jnp.float32),
        "beta1": 0.1 * jax.random.normal(ks[5], (1, cout), jnp.float32),
        "g2": 1.0 + 0.1 * jax.random.normal(ks[6], (1, cout), jnp.float32),
        "beta2": 0.1 * jax.random.normal(ks[7], (1, cout), jnp.float32),
    }
    if downsample:
        p["w_sc"] = conv_w(ks[8], cout, cin, 1, 1)
        p["b_sc"] = 0.1 * jax.random.normal(ks[9], (1, cout), jnp.float32)
        p["g_sc"] = 1.0 + 0.1 * jax.random.normal(ks[10], (1, cout), jnp.float32)
        p["beta_sc"] = 0.1 * jax.random.normal(ks[11], (1, cout), jnp.float32)
    return p


def _conv_ref(x, w, b, stride, pad):
    out = jax.lax.conv_general_dilated(
        x, w, window_strides=(stride, stride),
        padding=((pad, pad), (pad, pad)),
        dimension_numbers=("NCHW", "OIHW", "NCHW"))
    return out + b.reshape(1, -1, 1, 1)


def _bn_ref(x, gamma, beta):
    mean = jnp.mean(x, axis=(0, 2, 3), keepdims=True)
    var = jnp.mean((x - mean) ** 2, axis=(0, 2, 3), keepdims=True)
    xhat = (x - mean) * jax.lax.rsqrt(var + EPS)
    return xhat * gamma.reshape(1, -1, 1, 1) + beta.reshape(1, -1, 1, 1)


def resblock_ref(x, params, downsample):
    if downsample:
        sc = _bn_ref(_conv_ref(x, params["w_sc"], params["b_sc"], 2, 0),
                     params["g_sc"], params["beta_sc"])
        stride1 = 2
    else:
        sc = x
        stride1 = 1
    h = jax.nn.relu(_bn_ref(_conv_ref(x, params["w1"], params["b1"], stride1, 1),
                            params["g1"], params["beta1"]))
    h = jax.nn.relu(_bn_ref(_conv_ref(h, params["w2"], params["b2"], 1, 1),
                            params["g2"], params["beta2"]))
    return jax.nn.relu(h + sc)


# --------------------------------------------------------------------- main
if __name__ == "__main__":
    key = jax.random.PRNGKey(0)
    kx, kp1, kp2 = jax.random.split(key, 3)

    x = jax.random.normal(kx, (2, 4, 16, 16), jnp.float32)

    # Tolerance covers bf16 matmul operands plus the bf16 y1/h1/y2/shortcut
    # round trips (f32 reference).
    TOL = 7.5e-2

    # downsample=True: 4 -> 8 channels, spatial 16 -> 8
    params_ds = init_params(kp1, cin=4, cout=8, downsample=True)
    packed_ds = pack_params(params_ds, downsample=True)
    out_ds = jax.block_until_ready(
        resblock_forward(x, packed_ds, downsample=True, cout=8))
    ref_ds = resblock_ref(x, params_ds, downsample=True)
    assert out_ds.shape == (2, 8, 8, 8)
    assert float(jnp.max(jnp.abs(out_ds - ref_ds))) < TOL

    # downsample=False: identity shortcut, 4 -> 4 channels
    params_id = init_params(kp2, cin=4, cout=4, downsample=False)
    packed_id = pack_params(params_id, downsample=False)
    out_id = jax.block_until_ready(
        resblock_forward(x, packed_id, downsample=False, cout=4))
    ref_id = resblock_ref(x, params_id, downsample=False)
    assert out_id.shape == (2, 4, 16, 16)
    assert float(jnp.max(jnp.abs(out_id - ref_id))) < TOL

    print("KERNEL_OK")
</pallas_src>

<mosaic_0001>
module attributes {stable_mosaic.version = 11 : i64} {
  func.func @_conv_stats_kernel(%arg0: i32, %arg1: memref<128x128xbf16, #tpu.memory_space<vmem>>, %arg2: memref<128x256xbf16, #tpu.memory_space<vmem>>, %arg3: memref<128x256xbf16, #tpu.memory_space<vmem>>, %arg4: memref<1x1x256xf32, #tpu.memory_space<vmem>>, %arg5: memref<1x1x256xf32, #tpu.memory_space<vmem>>) attributes {dimension_semantics = [#tpu.dimension_semantics<parallel>], iteration_bounds = array<i64: 1>, scalar_prefetch = 0 : i64, scratch_operands = 0 : i64, tpu.core_type = #tpu.core_type<tc>, window_params = [{transform_indices = @transform_0, window_bounds = array<i64: 128, 128>}, {pipeline_mode = #tpu.pipeline_mode<synchronous>, transform_indices = @transform_1, window_bounds = array<i64: 128, 256>}, {transform_indices = @transform_2, window_bounds = array<i64: 128, 256>}, {transform_indices = @transform_3, window_bounds = array<i64: 1, 1, 256>}, {transform_indices = @transform_4, window_bounds = array<i64: 1, 1, 256>}]} {
    %c0 = arith.constant 0 : index
    %c0_0 = arith.constant 0 : index
    %0 = vector.load %arg1[%c0, %c0_0] : memref<128x128xbf16, #tpu.memory_space<vmem>>, vector<128x128xbf16>
    %c0_1 = arith.constant 0 : index
    %c0_2 = arith.constant 0 : index
    %1 = vector.load %arg2[%c0_1, %c0_2] : memref<128x256xbf16, #tpu.memory_space<vmem>>, vector<128x256xbf16>
    %cst = arith.constant dense<0.000000e+00> : vector<128x256xf32>
    %2 = tpu.matmul %0, %1, %cst {dimension_numbers = #tpu.dot_dimension_numbers<[1], [0], [0], [1], [0, 0, 1, 1], [], []>} : vector<128x128xbf16>, vector<128x256xbf16>, vector<128x256xf32> -> vector<128x256xf32>
    %3 = arith.truncf %2 : vector<128x256xf32> to vector<128x256xbf16>
    %c0_3 = arith.constant 0 : index
    %c0_4 = arith.constant 0 : index
    %4 = vector.load %arg3[%c0_3, %c0_4] : memref<128x256xbf16, #tpu.memory_space<vmem>>, vector<128x256xbf16>
    tpu.vector_store %arg3[%c0_3, %c0_4], %3 {strides = array<i32>} : memref<128x256xbf16, #tpu.memory_space<vmem>>, vector<128x256xbf16>,
    %cst_5 = arith.constant dense<0.000000e+00> : vector<256xf32>
    %5 = vector.multi_reduction <add>, %2, %cst_5 [0] : vector<128x256xf32> to vector<256xf32>
    %6 = vector.shape_cast %5 : vector<256xf32> to vector<1x256xf32>
    %c0_6 = arith.constant 0 : index
    %c0_7 = arith.constant 0 : index
    %c0_8 = arith.constant 0 : index
    %7 = vector.load %arg4[%c0_6, %c0_7, %c0_8] : memref<1x1x256xf32, #tpu.memory_space<vmem>>, vector<1x1x256xf32>
    %8 = vector.shape_cast %7 : vector<1x1x256xf32> to vector<1x256xf32>
    %9 = vector.shape_cast %6 : vector<1x256xf32> to vector<1x1x256xf32>
    tpu.vector_store %arg4[%c0_6, %c0_7, %c0_8], %9 {strides = array<i32>} : memref<1x1x256xf32, #tpu.memory_space<vmem>>, vector<1x1x256xf32>,
    %10 = arith.mulf %2, %2 : vector<128x256xf32>
    %cst_9 = arith.constant dense<0.000000e+00> : vector<256xf32>
    %11 = vector.multi_reduction <add>, %10, %cst_9 [0] : vector<128x256xf32> to vector<256xf32>
    %12 = vector.shape_cast %11 : vector<256xf32> to vector<1x256xf32>
    %c0_10 = arith.constant 0 : index
    %c0_11 = arith.constant 0 : index
    %c0_12 = arith.constant 0 : index
    %13 = vector.load %arg5[%c0_10, %c0_11, %c0_12] : memref<1x1x256xf32, #tpu.memory_space<vmem>>, vector<1x1x256xf32>
    %14 = vector.shape_cast %13 : vector<1x1x256xf32> to vector<1x256xf32>
    %15 = vector.shape_cast %12 : vector<1x256xf32> to vector<1x1x256xf32>
    tpu.vector_store %arg5[%c0_10, %c0_11, %c0_12], %15 {strides = array<i32>} : memref<1x1x256xf32, #tpu.memory_space<vmem>>, vector<1x1x256xf32>,
    return
  }
  func.func @transform_0(%arg0: i32) -> (i32, i32) {
    %c0_i32 = arith.constant 0 : i32
    %c0_i32_0 = arith.constant 0 : i32
    return %arg0, %c0_i32 : i32, i32
  }
  func.func @transform_1(%arg0: i32) -> (i32, i32) {
    %c0_i32 = arith.constant 0 : i32
    %c0_i32_0 = arith.constant 0 : i32
    %c0_i32_1 = arith.constant 0 : i32
    return %c0_i32, %c0_i32_0 : i32, i32
  }
  func.func @transform_2(%arg0: i32) -> (i32, i32) {
    %c0_i32 = arith.constant 0 : i32
    %c0_i32_0 = arith.constant 0 : i32
    return %arg0, %c0_i32 : i32, i32
  }
  func.func @transform_3(%arg0: i32) -> (i32, i32, i32) {
    %c0_i32 = arith.constant 0 : i32
    %c0_i32_0 = arith.constant 0 : i32
    %c0_i32_1 = arith.constant 0 : i32
    return %arg0, %c0_i32, %c0_i32_0 : i32, i32, i32
  }
  func.func @transform_4(%arg0: i32) -> (i32, i32, i32) {
    %c0_i32 = arith.constant 0 : i32
    %c0_i32_0 = arith.constant 0 : i32
    %c0_i32_1 = arith.constant 0 : i32
    return %arg0, %c0_i32, %c0_i32_0 : i32, i32, i32
  }
}

module attributes {stable_mosaic.version = 11 : i64} {
  func.func @_bn_relu_kernel(%arg0: i32, %arg1: memref<128x128xbf16, #tpu.memory_space<vmem>>, %arg2: memref<1x128xf32, #tpu.memory_space<vmem>>, %arg3: memref<1x128xf32, #tpu.memory_space<vmem>>, %arg4: memref<128x128xbf16, #tpu.memory_space<vmem>>) attributes {dimension_semantics = [#tpu.dimension_semantics<parallel>], iteration_bounds = array<i64: 1>, scalar_prefetch = 0 : i64, scratch_operands = 0 : i64, tpu.core_type = #tpu.core_type<tc>, window_params = [{transform_indices = @transform_0, window_bounds = array<i64: 128, 128>}, {pipeline_mode = #tpu.pipeline_mode<synchronous>, transform_indices = @transform_1, window_bounds = array<i64: 1, 128>}, {pipeline_mode = #tpu.pipeline_mode<synchronous>, transform_indices = @transform_2, window_bounds = array<i64: 1, 128>}, {transform_indices = @transform_3, window_bounds = array<i64: 128, 128>}]} {
    %c0 = arith.constant 0 : index
    %c0_0 = arith.constant 0 : index
    %0 = vector.load %arg1[%c0, %c0_0] : memref<128x128xbf16, #tpu.memory_space<vmem>>, vector<128x128xbf16>
    %1 = arith.extf %0 : vector<128x128xbf16> to vector<128x128xf32>
    %c0_1 = arith.constant 0 : index
    %c0_2 = arith.constant 0 : index
    %2 = vector.load %arg2[%c0_1, %c0_2] : memref<1x128xf32, #tpu.memory_space<vmem>>, vector<1x128xf32>
    %3 = vector.broadcast %2 : vector<1x128xf32> to vector<128x128xf32>
    %4 = arith.mulf %1, %3 : vector<128x128xf32>
    %c0_3 = arith.constant 0 : index
    %c0_4 = arith.constant 0 : index
    %5 = vector.load %arg3[%c0_3, %c0_4] : memref<1x128xf32, #tpu.memory_space<vmem>>, vector<1x128xf32>
    %6 = vector.broadcast %5 : vector<1x128xf32> to vector<128x128xf32>
    %7 = arith.addf %4, %6 : vector<128x128xf32>
    %cst = arith.constant 0.000000e+00 : f32
    %8 = vector.broadcast %cst : f32 to vector<128x128xf32>
    %9 = arith.maximumf %7, %8 : vector<128x128xf32>
    %10 = arith.truncf %9 : vector<128x128xf32> to vector<128x128xbf16>
    %c0_5 = arith.constant 0 : index
    %c0_6 = arith.constant 0 : index
    %11 = vector.load %arg4[%c0_5, %c0_6] : memref<128x128xbf16, #tpu.memory_space<vmem>>, vector<128x128xbf16>
    tpu.vector_store %arg4[%c0_5, %c0_6], %10 {strides = array<i32>} : memref<128x128xbf16, #tpu.memory_space<vmem>>, vector<128x128xbf16>,
    return
  }
  func.func @transform_0(%arg0: i32) -> (i32, i32) {
    %c0_i32 = arith.constant 0 : i32
    %c0_i32_0 = arith.constant 0 : i32
    return %arg0, %c0_i32 : i32, i32
  }
  func.func @transform_1(%arg0: i32) -> (i32, i32) {
    %c0_i32 = arith.constant 0 : i32
    %c0_i32_0 = arith.constant 0 : i32
    %c0_i32_1 = arith.constant 0 : i32
    return %c0_i32, %c0_i32_0 : i32, i32
  }
  func.func @transform_2(%arg0: i32) -> (i32, i32) {
    %c0_i32 = arith.constant 0 : i32
    %c0_i32_0 = arith.constant 0 : i32
    %c0_i32_1 = arith.constant 0 : i32
    return %c0_i32, %c0_i32_0 : i32, i32
  }
  func.func @transform_3(%arg0: i32) -> (i32, i32) {
    %c0_i32 = arith.constant 0 : i32
    %c0_i32_0 = arith.constant 0 : i32
    return %arg0, %c0_i32 : i32, i32
  }
}

module attributes {stable_mosaic.version = 11 : i64} {
  func.func @kernel(%arg0: i32, %arg1: memref<128x128xbf16, #tpu.memory_space<vmem>>, %arg2: memref<1x128xf32, #tpu.memory_space<vmem>>, %arg3: memref<1x128xf32, #tpu.memory_space<vmem>>, %arg4: memref<128x128xbf16, #tpu.memory_space<vmem>>, %arg5: memref<1x128xf32, #tpu.memory_space<vmem>>, %arg6: memref<1x128xf32, #tpu.memory_space<vmem>>, %arg7: memref<128x128xf32, #tpu.memory_space<vmem>>) attributes {dimension_semantics = [#tpu.dimension_semantics<parallel>], iteration_bounds = array<i64: 1>, scalar_prefetch = 0 : i64, scratch_operands = 0 : i64, tpu.core_type = #tpu.core_type<tc>, window_params = [{transform_indices = @transform_0, window_bounds = array<i64: 128, 128>}, {pipeline_mode = #tpu.pipeline_mode<synchronous>, transform_indices = @transform_1, window_bounds = array<i64: 1, 128>}, {pipeline_mode = #tpu.pipeline_mode<synchronous>, transform_indices = @transform_2, window_bounds = array<i64: 1, 128>}, {transform_indices = @transform_3, window_bounds = array<i64: 128, 128>}, {pipeline_mode = #tpu.pipeline_mode<synchronous>, transform_indices = @transform_4, window_bounds = array<i64: 1, 128>}, {pipeline_mode = #tpu.pipeline_mode<synchronous>, transform_indices = @transform_5, window_bounds = array<i64: 1, 128>}, {transform_indices = @transform_6, window_bounds = array<i64: 128, 128>}]} {
    %c0 = arith.constant 0 : index
    %c0_0 = arith.constant 0 : index
    %0 = vector.load %arg1[%c0, %c0_0] : memref<128x128xbf16, #tpu.memory_space<vmem>>, vector<128x128xbf16>
    %1 = arith.extf %0 : vector<128x128xbf16> to vector<128x128xf32>
    %c0_1 = arith.constant 0 : index
    %c0_2 = arith.constant 0 : index
    %2 = vector.load %arg2[%c0_1, %c0_2] : memref<1x128xf32, #tpu.memory_space<vmem>>, vector<1x128xf32>
    %3 = vector.broadcast %2 : vector<1x128xf32> to vector<128x128xf32>
    %4 = arith.mulf %1, %3 : vector<128x128xf32>
    %c0_3 = arith.constant 0 : index
    %c0_4 = arith.constant 0 : index
    %5 = vector.load %arg3[%c0_3, %c0_4] : memref<1x128xf32, #tpu.memory_space<vmem>>, vector<1x128xf32>
    %6 = vector.broadcast %5 : vector<1x128xf32> to vector<128x128xf32>
    %7 = arith.addf %4, %6 : vector<128x128xf32>
    %cst = arith.constant 0.000000e+00 : f32
    %8 = vector.broadcast %cst : f32 to vector<128x128xf32>
    %9 = arith.maximumf %7, %8 : vector<128x128xf32>
    %c0_5 = arith.constant 0 : index
    %c0_6 = arith.constant 0 : index
    %10 = vector.load %arg4[%c0_5, %c0_6] : memref<128x128xbf16, #tpu.memory_space<vmem>>, vector<128x128xbf16>
    %11 = arith.extf %10 : vector<128x128xbf16> to vector<128x128xf32>
    %c0_7 = arith.constant 0 : index
    %c0_8 = arith.constant 0 : index
    %12 = vector.load %arg5[%c0_7, %c0_8] : memref<1x128xf32, #tpu.memory_space<vmem>>, vector<1x128xf32>
    %13 = vector.broadcast %12 : vector<1x128xf32> to vector<128x128xf32>
    %14 = arith.mulf %11, %13 : vector<128x128xf32>
    %c0_9 = arith.constant 0 : index
    %c0_10 = arith.constant 0 : index
    %15 = vector.load %arg6[%c0_9, %c0_10] : memref<1x128xf32, #tpu.memory_space<vmem>>, vector<1x128xf32>
    %16 = vector.broadcast %15 : vector<1x128xf32> to vector<128x128xf32>
    %17 = arith.addf %14, %16 : vector<128x128xf32>
    %18 = arith.addf %9, %17 : vector<128x128xf32>
    %cst_11 = arith.constant 0.000000e+00 : f32
    %19 = vector.broadcast %cst_11 : f32 to vector<128x128xf32>
    %20 = arith.maximumf %18, %19 : vector<128x128xf32>
    %c0_12 = arith.constant 0 : index
    %c0_13 = arith.constant 0 : index
    %21 = vector.load %arg7[%c0_12, %c0_13] : memref<128x128xf32, #tpu.memory_space<vmem>>, vector<128x128xf32>
    tpu.vector_store %arg7[%c0_12, %c0_13], %20 {strides = array<i32>} : memref<128x128xf32, #tpu.memory_space<vmem>>, vector<128x128xf32>,
    return
  }
  func.func @transform_0(%arg0: i32) -> (i32, i32) {
    %c0_i32 = arith.constant 0 : i32
    %c0_i32_0 = arith.constant 0 : i32
    return %arg0, %c0_i32 : i32, i32
  }
  func.func @transform_1(%arg0: i32) -> (i32, i32) {
    %c0_i32 = arith.constant 0 : i32
    %c0_i32_0 = arith.constant 0 : i32
    %c0_i32_1 = arith.constant 0 : i32
    return %c0_i32, %c0_i32_0 : i32, i32
  }
  func.func @transform_2(%arg0: i32) -> (i32, i32) {
    %c0_i32 = arith.constant 0 : i32
    %c0_i32_0 = arith.constant 0 : i32
    %c0_i32_1 = arith.constant 0 : i32
    return %c0_i32, %c0_i32_0 : i32, i32
  }
  func.func @transform_3(%arg0: i32) -> (i32, i32) {
    %c1_i32 = arith.constant 1 : i32
    %c0_i32 = arith.constant 0 : i32
    return %arg0, %c1_i32 : i32, i32
  }
  func.func @transform_4(%arg0: i32) -> (i32, i32) {
    %c0_i32 = arith.constant 0 : i32
    %c0_i32_0 = arith.constant 0 : i32
    %c0_i32_1 = arith.constant 0 : i32
    return %c0_i32, %c0_i32_0 : i32, i32
  }
  func.func @transform_5(%arg0: i32) -> (i32, i32) {
    %c0_i32 = arith.constant 0 : i32
    %c0_i32_0 = arith.constant 0 : i32
    %c0_i32_1 = arith.constant 0 : i32
    return %c0_i32, %c0_i32_0 : i32, i32
  }
  func.func @transform_6(%arg0: i32) -> (i32, i32) {
    %c0_i32 = arith.constant 0 : i32
    %c0_i32_0 = arith.constant 0 : i32
    return %arg0, %c0_i32 : i32, i32
  }
}

module attributes {stable_mosaic.version = 11 : i64} {
  func.func @_conv_stats_kernel(%arg0: i32, %arg1: memref<128x128xbf16, #tpu.memory_space<vmem>>, %arg2: memref<128x128xbf16, #tpu.memory_space<vmem>>, %arg3: memref<128x128xbf16, #tpu.memory_space<vmem>>, %arg4: memref<1x1x128xf32, #tpu.memory_space<vmem>>, %arg5: memref<1x1x128xf32, #tpu.memory_space<vmem>>) attributes {dimension_semantics = [#tpu.dimension_semantics<parallel>], iteration_bounds = array<i64: 1>, scalar_prefetch = 0 : i64, scratch_operands = 0 : i64, tpu.core_type = #tpu.core_type<tc>, window_params = [{transform_indices = @transform_0, window_bounds = array<i64: 128, 128>}, {pipeline_mode = #tpu.pipeline_mode<synchronous>, transform_indices = @transform_1, window_bounds = array<i64: 128, 128>}, {transform_indices = @transform_2, window_bounds = array<i64: 128, 128>}, {transform_indices = @transform_3, window_bounds = array<i64: 1, 1, 128>}, {transform_indices = @transform_4, window_bounds = array<i64: 1, 1, 128>}]} {
    %c0 = arith.constant 0 : index
    %c0_0 = arith.constant 0 : index
    %0 = vector.load %arg1[%c0, %c0_0] : memref<128x128xbf16, #tpu.memory_space<vmem>>, vector<128x128xbf16>
    %c0_1 = arith.constant 0 : index
    %c0_2 = arith.constant 0 : index
    %1 = vector.load %arg2[%c0_1, %c0_2] : memref<128x128xbf16, #tpu.memory_space<vmem>>, vector<128x128xbf16>
    %cst = arith.constant dense<0.000000e+00> : vector<128x128xf32>
    %2 = tpu.matmul %0, %1, %cst {dimension_numbers = #tpu.dot_dimension_numbers<[1], [0], [0], [1], [0, 0, 1, 1], [], []>} : vector<128x128xbf16>, vector<128x128xbf16>, vector<128x128xf32> -> vector<128x128xf32>
    %3 = arith.truncf %2 : vector<128x128xf32> to vector<128x128xbf16>
    %c0_3 = arith.constant 0 : index
    %c0_4 = arith.constant 0 : index
    %4 = vector.load %arg3[%c0_3, %c0_4] : memref<128x128xbf16, #tpu.memory_space<vmem>>, vector<128x128xbf16>
    tpu.vector_store %arg3[%c0_3, %c0_4], %3 {strides = array<i32>} : memref<128x128xbf16, #tpu.memory_space<vmem>>, vector<128x128xbf16>,
    %cst_5 = arith.constant dense<0.000000e+00> : vector<128xf32>
    %5 = vector.multi_reduction <add>, %2, %cst_5 [0] : vector<128x128xf32> to vector<128xf32>
    %6 = vector.shape_cast %5 : vector<128xf32> to vector<1x128xf32>
    %c0_6 = arith.constant 0 : index
    %c0_7 = arith.constant 0 : index
    %c0_8 = arith.constant 0 : index
    %7 = vector.load %arg4[%c0_6, %c0_7, %c0_8] : memref<1x1x128xf32, #tpu.memory_space<vmem>>, vector<1x1x128xf32>
    %8 = vector.shape_cast %7 : vector<1x1x128xf32> to vector<1x128xf32>
    %9 = vector.shape_cast %6 : vector<1x128xf32> to vector<1x1x128xf32>
    tpu.vector_store %arg4[%c0_6, %c0_7, %c0_8], %9 {strides = array<i32>} : memref<1x1x128xf32, #tpu.memory_space<vmem>>, vector<1x1x128xf32>,
    %10 = arith.mulf %2, %2 : vector<128x128xf32>
    %cst_9 = arith.constant dense<0.000000e+00> : vector<128xf32>
    %11 = vector.multi_reduction <add>, %10, %cst_9 [0] : vector<128x128xf32> to vector<128xf32>
    %12 = vector.shape_cast %11 : vector<128xf32> to vector<1x128xf32>
    %c0_10 = arith.constant 0 : index
    %c0_11 = arith.constant 0 : index
    %c0_12 = arith.constant 0 : index
    %13 = vector.load %arg5[%c0_10, %c0_11, %c0_12] : memref<1x1x128xf32, #tpu.memory_space<vmem>>, vector<1x1x128xf32>
    %14 = vector.shape_cast %13 : vector<1x1x128xf32> to vector<1x128xf32>
    %15 = vector.shape_cast %12 : vector<1x128xf32> to vector<1x1x128xf32>
    tpu.vector_store %arg5[%c0_10, %c0_11, %c0_12], %15 {strides = array<i32>} : memref<1x1x128xf32, #tpu.memory_space<vmem>>, vector<1x1x128xf32>,
    return
  }
  func.func @transform_0(%arg0: i32) -> (i32, i32) {
    %c0_i32 = arith.constant 0 : i32
    %c0_i32_0 = arith.constant 0 : i32
    return %arg0, %c0_i32 : i32, i32
  }
  func.func @transform_1(%arg0: i32) -> (i32, i32) {
    %c0_i32 = arith.constant 0 : i32
    %c0_i32_0 = arith.constant 0 : i32
    %c0_i32_1 = arith.constant 0 : i32
    return %c0_i32, %c0_i32_0 : i32, i32
  }
  func.func @transform_2(%arg0: i32) -> (i32, i32) {
    %c0_i32 = arith.constant 0 : i32
    %c0_i32_0 = arith.constant 0 : i32
    return %arg0, %c0_i32 : i32, i32
  }
  func.func @transform_3(%arg0: i32) -> (i32, i32, i32) {
    %c0_i32 = arith.constant 0 : i32
    %c0_i32_0 = arith.constant 0 : i32
    %c0_i32_1 = arith.constant 0 : i32
    return %arg0, %c0_i32, %c0_i32_0 : i32, i32, i32
  }
  func.func @transform_4(%arg0: i32) -> (i32, i32, i32) {
    %c0_i32 = arith.constant 0 : i32
    %c0_i32_0 = arith.constant 0 : i32
    %c0_i32_1 = arith.constant 0 : i32
    return %arg0, %c0_i32, %c0_i32_0 : i32, i32, i32
  }
}

</mosaic_0001>

<bundles_post_ra>
// kernel: resblock_forward.5
= control target key start
LH: loop header
LB: loop body
LE: loop exit
PB: predicated region body
PF: predicated region fallthrough
CT: control target
= control target key end

     0   :  { %s551_s0 = inlined_call_operand.vmem [shape: bf16[128,256], index: 0, kind: input, shape index: {}]   ;;  %s552_s1 = inlined_call_operand.vmem [shape: f32[1,128], index: 1, kind: input, shape index: {}]   ;;  %s553_s2 = inlined_call_operand.vmem [shape: f32[1,128], index: 2, kind: input, shape index: {}]   ;;  %s554_s3 = inlined_call_operand.vmem [shape: bf16[128,128], index: 3, kind: output, shape index: {}]  }
   0x1   :  { %v25_v0 = vld [vmem:[%s551_s0] sm:$0xf]  ;;  %v27_v1 = vld [vmem:[%s551_s0 + $0x8] sm:$0xf]  ;;  %v29_v2 = vld [vmem:[%s551_s0 + $0x10] sm:$0xf] }
   0x2   :  { %26 = vst [vmem:[#allocation2] sm:$0xf] %v25_v0  ;;  %28 = vst [vmem:[#allocation2 + $0x4] sm:$0xf] %v27_v1  ;;  %v31_v3 = vld [vmem:[%s551_s0 + $0x18] sm:$0xf] }
   0x3   :  { %30 = vst [vmem:[#allocation2 + $0x8] sm:$0xf] %v29_v2  ;;  %v33_v4 = vld [vmem:[%s551_s0 + $0x20] sm:$0xf]  ;;  %v35_v5 = vld [vmem:[%s551_s0 + $0x28] sm:$0xf] }
   0x4   :  { %32 = vst [vmem:[#allocation2 + $0xc] sm:$0xf] %v31_v3  ;;  %34 = vst [vmem:[#allocation2 + $0x10] sm:$0xf] %v33_v4  ;;  %v37_v6 = vld [vmem:[%s551_s0 + $0x30] sm:$0xf] }
   0x5   :  { %36 = vst [vmem:[#allocation2 + $0x14] sm:$0xf] %v35_v5  ;;  %v39_v7 = vld [vmem:[%s551_s0 + $0x38] sm:$0xf]  ;;  %v41_v8 = vld [vmem:[%s551_s0 + $0x40] sm:$0xf] }
   0x6   :  { %38 = vst [vmem:[#allocation2 + $0x18] sm:$0xf] %v37_v6  ;;  %40 = vst [vmem:[#allocation2 + $0x1c] sm:$0xf] %v39_v7  ;;  %v43_v9 = vld [vmem:[%s551_s0 + $0x48] sm:$0xf] }
   0x7   :  { %42 = vst [vmem:[#allocation2 + $0x20] sm:$0xf] %v41_v8  ;;  %v45_v10 = vld [vmem:[%s551_s0 + $0x50] sm:$0xf]  ;;  %v47_v11 = vld [vmem:[%s551_s0 + $0x58] sm:$0xf] }
   0x8   :  { %44 = vst [vmem:[#allocation2 + $0x24] sm:$0xf] %v43_v9  ;;  %46 = vst [vmem:[#allocation2 + $0x28] sm:$0xf] %v45_v10  ;;  %v49_v12 = vld [vmem:[%s551_s0 + $0x60] sm:$0xf] }
   0x9   :  { %48 = vst [vmem:[#allocation2 + $0x2c] sm:$0xf] %v47_v11  ;;  %v51_v13 = vld [vmem:[%s551_s0 + $0x68] sm:$0xf]  ;;  %v53_v14 = vld [vmem:[%s551_s0 + $0x70] sm:$0xf] }
   0xa   :  { %50 = vst [vmem:[#allocation2 + $0x30] sm:$0xf] %v49_v12  ;;  %52 = vst [vmem:[#allocation2 + $0x34] sm:$0xf] %v51_v13  ;;  %v55_v15 = vld [vmem:[%s551_s0 + $0x78] sm:$0xf] }
   0xb   :  { %54 = vst [vmem:[#allocation2 + $0x38] sm:$0xf] %v53_v14  ;;  %56 = vst [vmem:[#allocation2 + $0x3c] sm:$0xf] %v55_v15  ;;  %v332_v16 = vld [vmem:[#allocation2] sm:$0xff]   ;;  %v403_v20 = vld [vmem:[#allocation2 + $0x8] sm:$0xff]  }
   0xc   :  { %v488_v17 = vld [vmem:[%s552_s1] ss:$0 sm:$0xff]  ;;  %v333_v18 = vunpack.c.l.bf16 %v332_v16  ;;  %v334_v19 = vunpack.c.h.bf16 %v332_v16  ;;  %v404_v21 = vld [vmem:[#allocation2 + $0x10] sm:$0xff]   ;;  %v337_v23 = vunpack.c.l.bf16 %v403_v20  ;;  %v338_v24 = vunpack.c.h.bf16 %v403_v20 }
   0xd   :  { %v493_v22 = vld [vmem:[%s553_s2] ss:$0 sm:$0xff]  ;;  %v341_v25 = vunpack.c.l.bf16 %v404_v21  ;;  %v342_v26 = vunpack.c.h.bf16 %v404_v21  ;;  %v405_v27 = vld [vmem:[#allocation2 + $0x18] sm:$0xff]  }
   0xe   :  { %v154_v28 = vmul.f32 %v333_v18, %v488_v17  ;;  %v155_v29 = vmul.f32 %v334_v19, %v488_v17  ;;  %v345_v30 = vunpack.c.l.bf16 %v405_v27  ;;  %v346_v31 = vunpack.c.h.bf16 %v405_v27 }
   0xf   :  { %v156_v32 = vmul.f32 %v337_v23, %v488_v17  ;;  %v157_v33 = vmul.f32 %v338_v24, %v488_v17  ;;  %v158_v34 = vmul.f32 %v341_v25, %v488_v17  ;;  %v159_v35 = vmul.f32 %v342_v26, %v488_v17  ;;  %v406_v44 = vld [vmem:[#allocation2 + $0x20] sm:$0xff]  }
  0x10   :  { %v177_v36 = vadd.f32 %v493_v22, %v154_v28  ;;  %v178_v37 = vadd.f32 %v493_v22, %v155_v29  ;;  %v160_v38 = vmul.f32 %v345_v30, %v488_v17  ;;  %v161_v39 = vmul.f32 %v346_v31, %v488_v17  ;;  %v407_v49 = vld [vmem:[#allocation2 + $0x28] sm:$0xff]  }
  0x11   :  { %v179_v40 = vadd.f32 %v493_v22, %v156_v32  ;;  %v180_v41 = vadd.f32 %v493_v22, %v157_v33  ;;  %v181_v42 = vadd.f32 %v493_v22, %v158_v34  ;;  %v182_v43 = vadd.f32 %v493_v22, %v159_v35  ;;  %v408_v54 = vld [vmem:[#allocation2 + $0x30] sm:$0xff]  }
  0x12   :  { %v193_v45 = vmax.f32 %v177_v36, 0.0  ;;  %v194_v46 = vmax.f32 %v178_v37, 0.0  ;;  %v183_v47 = vadd.f32 %v493_v22, %v160_v38  ;;  %v184_v48 = vadd.f32 %v493_v22, %v161_v39  ;;  %v409_v59 = vld [vmem:[#allocation2 + $0x38] sm:$0xff]  }
  0x13   :  { %v195_v50 = vmax.f32 %v179_v40, 0.0  ;;  %v196_v51 = vmax.f32 %v180_v41, 0.0  ;;  %v197_v52 = vmax.f32 %v181_v42, 0.0  ;;  %v198_v53 = vmax.f32 %v182_v43, 0.0 }
  0x14   :  { %v366_v55 = vpack.c.bf16 %v194_v46, %v193_v45  ;;  %v199_v56 = vmax.f32 %v183_v47, 0.0  ;;  %v200_v57 = vmax.f32 %v184_v48, 0.0  ;;  %v349_v58 = vunpack.c.l.bf16 %v406_v44 }
  0x15   :  { %v371_v60 = vpack.c.bf16 %v196_v51, %v195_v50  ;;  %v376_v61 = vpack.c.bf16 %v198_v53, %v197_v52  ;;  %v350_v62 = vunpack.c.h.bf16 %v406_v44  ;;  %v353_v63 = vunpack.c.l.bf16 %v407_v49 }
  0x16   :  { %367 = vst [vmem:[%s554_s3] sm:$0xff] %v366_v55   ;;  %v381_v0 = vpack.c.bf16 %v200_v57, %v199_v56  ;;  %v162_v1 = vmul.f32 %v349_v58, %v488_v17  ;;  %v354_v2 = vunpack.c.h.bf16 %v407_v49  ;;  %v357_v3 = vunpack.c.l.bf16 %v408_v54 }
  0x17   :  { %410 = vst [vmem:[%s554_s3 + $0x8] sm:$0xff] %v371_v60   ;;  %411 = vst [vmem:[%s554_s3 + $0x10] sm:$0xff] %v376_v61   ;;  %v163_v4 = vmul.f32 %v350_v62, %v488_v17  ;;  %v164_v5 = vmul.f32 %v353_v63, %v488_v17  ;;  %v358_v6 = vunpack.c.h.bf16 %v408_v54  ;;  %v361_v7 = vunpack.c.l.bf16 %v409_v59 }
  0x18   :  { %412 = vst [vmem:[%s554_s3 + $0x18] sm:$0xff] %v381_v0   ;;  %v185_v8 = vadd.f32 %v493_v22, %v162_v1  ;;  %v165_v9 = vmul.f32 %v354_v2, %v488_v17  ;;  %v166_v10 = vmul.f32 %v357_v3, %v488_v17  ;;  %v362_v11 = vunpack.c.h.bf16 %v409_v59 }
  0x19   :  { %v186_v12 = vadd.f32 %v493_v22, %v163_v4  ;;  %v187_v13 = vadd.f32 %v493_v22, %v164_v5  ;;  %v167_v14 = vmul.f32 %v358_v6, %v488_v17  ;;  %v168_v15 = vmul.f32 %v361_v7, %v488_v17 }
  0x1a   :  { %v201_v16 = vmax.f32 %v185_v8, 0.0  ;;  %v188_v18 = vadd.f32 %v493_v22, %v165_v9  ;;  %v189_v19 = vadd.f32 %v493_v22, %v166_v10  ;;  %v169_v20 = vmul.f32 %v362_v11, %v488_v17 }
  0x1b   :  { %v202_v21 = vmax.f32 %v186_v12, 0.0  ;;  %v203_v23 = vmax.f32 %v187_v13, 0.0  ;;  %v190_v24 = vadd.f32 %v493_v22, %v167_v14  ;;  %v191_v25 = vadd.f32 %v493_v22, %v168_v15 }
  0x1c   :  { %v204_v26 = vmax.f32 %v188_v18, 0.0  ;;  %v205_v27 = vmax.f32 %v189_v19, 0.0  ;;  %v192_v28 = vadd.f32 %v493_v22, %v169_v20 }
  0x1d   :  { %v386_v29 = vpack.c.bf16 %v202_v21, %v201_v16  ;;  %v206_v30 = vmax.f32 %v190_v24, 0.0  ;;  %v207_v31 = vmax.f32 %v191_v25, 0.0 }
  0x1e   :  { %v391_v32 = vpack.c.bf16 %v204_v26, %v203_v23  ;;  %v208_v33 = vmax.f32 %v192_v28, 0.0 }
  0x1f   :  { %413 = vst [vmem:[%s554_s3 + $0x20] sm:$0xff] %v386_v29   ;;  %v396_v17 = vpack.c.bf16 %v206_v30, %v205_v27 }
  0x20   :  { %414 = vst [vmem:[%s554_s3 + $0x28] sm:$0xff] %v391_v32   ;;  %v401_v34 = vpack.c.bf16 %v208_v33, %v207_v31 }
  0x21   :  { %415 = vst [vmem:[%s554_s3 + $0x30] sm:$0xff] %v396_v17  }
  0x22   :  { %416 = vst [vmem:[%s554_s3 + $0x38] sm:$0xff] %v401_v34  }

// kernel: resblock_forward.4
= control target key start
LH: loop header
LB: loop body
LE: loop exit
PB: predicated region body
PF: predicated region fallthrough
CT: control target
= control target key end

     0   :  { %v676_v1 = vmov 0   ;;  %s915_s1 = inlined_call_operand.vmem [shape: bf16[128,256], index: 1, kind: input, shape index: {}]   ;;  %s916_s0 = inlined_call_operand.vmem [shape: bf16[128,128], index: 0, kind: input, shape index: {}]   ;;  %s917_s2 = inlined_call_operand.vmem [shape: bf16[128,256], index: 2, kind: output, shape index: {0}]   ;;  %s918_s3 = inlined_call_operand.vmem [shape: f32[1,1,256], index: 3, kind: output, shape index: {1}]   ;;  %s919_s4 = inlined_call_operand.vmem [shape: f32[1,1,256], index: 4, kind: output, shape index: {2}]  }
   0x1   :  { %v644_v0 = vld [vmem:[%s915_s1 + $0x4] ss:$8 sps:$4 sm:$0xff]   ;;  %207 = vmatprep.mubr.bf16.mxu0 %v676_v1  ;;  %247 = vmatprep.mubr.bf16.mxu1 %v676_v1  ;;  %v646_v2 = vld [vmem:[%s915_s1] ss:$8 sps:$4 sm:$0xff]   ;;  %v647_v3 = vld [vmem:[%s915_s1 + $0x14] ss:$8 sps:$4 sm:$0xff]  }
   0x2   :  { %175 = vmatprep.subr.bf16.mxu0 %v644_v0  ;;  %626 = vmatprep.subr.bf16.mxu1 %v644_v0  ;;  %v649_v4 = vld [vmem:[%s915_s1 + $0x10] ss:$8 sps:$4 sm:$0xff]   ;;  %v650_v5 = vld [vmem:[%s915_s1 + $0x24] ss:$8 sps:$4 sm:$0xff]   ;;  %v652_v6 = vld [vmem:[%s915_s1 + $0x20] ss:$8 sps:$4 sm:$0xff]  }
   0x3   :  { %176 = vmatpush1.bf16.msra.mxu0 %v646_v2  ;;  %634 = vmatpush1.bf16.msra.mxu1 %v646_v2  ;;  %v653_v7 = vld [vmem:[%s915_s1 + $0x34] ss:$8 sps:$4 sm:$0xff]   ;;  %v655_v8 = vld [vmem:[%s915_s1 + $0x30] ss:$8 sps:$4 sm:$0xff]   ;;  %v656_v9 = vld [vmem:[%s915_s1 + $0x44] ss:$8 sps:$4 sm:$0xff]  }
   0x4   :  { %177 = vmatprep.subr.bf16.mxu0 %v647_v3  ;;  %627 = vmatprep.subr.bf16.mxu1 %v647_v3  ;;  %v658_v10 = vld [vmem:[%s915_s1 + $0x40] ss:$8 sps:$4 sm:$0xff]   ;;  %v659_v11 = vld [vmem:[%s915_s1 + $0x54] ss:$8 sps:$4 sm:$0xff]   ;;  %v661_v12 = vld [vmem:[%s915_s1 + $0x50] ss:$8 sps:$4 sm:$0xff]  }
   0x5   :  { %v662_v13 = vld [vmem:[%s915_s1 + $0x64] ss:$8 sps:$4 sm:$0xff]   ;;  %v664_v14 = vld [vmem:[%s915_s1 + $0x60] ss:$8 sps:$4 sm:$0xff]   ;;  %v665_v15 = vld [vmem:[%s915_s1 + $0x74] ss:$8 sps:$4 sm:$0xff]  }
   0x6   :  { %v667_v16 = vld [vmem:[%s915_s1 + $0x70] ss:$8 sps:$4 sm:$0xff]   ;;  %v668_v17 = vld [vmem:[%s916_s0] sm:$0xff]   ;;  %v669_v19 = vld [vmem:[%s916_s0 + $0x8] sm:$0xff]  }
   0x7   :  { %178 = vmatpush1.bf16.msra.mxu0 %v649_v4  ;;  %635 = vmatpush1.bf16.msra.mxu1 %v649_v4  ;;  %v670_v18 = vld [vmem:[%s916_s0 + $0x20] sm:$0xff]   ;;  %v672_v20 = vld [vmem:[%s916_s0 + $0x28] sm:$0xff]   ;;  %v671_v21 = vld [vmem:[%s916_s0 + $0x10] sm:$0xff]  }
   0x8   :  { %179 = vmatprep.subr.bf16.mxu0 %v650_v5  ;;  %628 = vmatprep.subr.bf16.mxu1 %v650_v5  ;;  %v674_v22 = vld [vmem:[%s916_s0 + $0x30] sm:$0xff]   ;;  %v673_v23 = vld [vmem:[%s916_s0 + $0x18] sm:$0xff]  }
   0x9   :  { %v675_v24 = vld [vmem:[%s916_s0 + $0x38] sm:$0xff]  }
   0xb   :  { %180 = vmatpush1.bf16.msra.mxu0 %v652_v6  ;;  %636 = vmatpush1.bf16.msra.mxu1 %v652_v6 }
   0xc   :  { %181 = vmatprep.subr.bf16.mxu0 %v653_v7  ;;  %629 = vmatprep.subr.bf16.mxu1 %v653_v7 }
   0xf   :  { %182 = vmatpush1.bf16.msra.mxu0 %v655_v8  ;;  %637 = vmatpush1.bf16.msra.mxu1 %v655_v8 }
  0x10   :  { %183 = vmatprep.subr.bf16.mxu0 %v656_v9  ;;  %630 = vmatprep.subr.bf16.mxu1 %v656_v9 }
  0x13   :  { %184 = vmatpush1.bf16.msra.mxu0 %v658_v10  ;;  %638 = vmatpush1.bf16.msra.mxu1 %v658_v10 }
  0x14   :  { %185 = vmatprep.subr.bf16.mxu0 %v659_v11  ;;  %631 = vmatprep.subr.bf16.mxu1 %v659_v11 }
  0x17   :  { %186 = vmatpush1.bf16.msra.mxu0 %v661_v12  ;;  %639 = vmatpush1.bf16.msra.mxu1 %v661_v12 }
  0x18   :  { %187 = vmatprep.subr.bf16.mxu0 %v662_v13  ;;  %632 = vmatprep.subr.bf16.mxu1 %v662_v13 }
  0x1b   :  { %188 = vmatpush1.bf16.msra.mxu0 %v664_v14  ;;  %640 = vmatpush1.bf16.msra.mxu1 %v664_v14 }
  0x1c   :  { %189 = vmatprep.subr.bf16.mxu0 %v665_v15  ;;  %633 = vmatprep.subr.bf16.mxu1 %v665_v15 }
  0x1f   :  { %190 = vmatpush1.bf16.msra.mxu0 %v667_v16  ;;  %641 = vmatpush1.bf16.msra.mxu1 %v667_v16 }
  0x22   :  { %208 = vmatmul.mubr.bf16.vlgmr.msra.gmra.mrb[0].mxu0 %v668_v17  ;;  %248 = vmatmul.mubr.bf16.vlgmr.msra.gmra.mrb[0].mxu1 %v670_v18 }
  0x23   :  { %217 = vmatprep.mubr.bf16.mxu0 %v676_v1  ;;  %257 = vmatprep.mubr.bf16.mxu1 %v676_v1 }
  0x2a   :  { %218 = vmatmul.mubr.bf16.gmra.mrb[4].mxu0 %v669_v19  ;;  %258 = vmatmul.mubr.bf16.gmra.mrb[4].mxu1 %v672_v20 }
  0x2b   :  { %227 = vmatprep.mubr.bf16.mxu0 %v676_v1  ;;  %267 = vmatprep.mubr.bf16.mxu1 %v676_v1 }
  0x32   :  { %228 = vmatmul.mubr.bf16.gmra.mrb[8].mxu0 %v671_v21  ;;  %268 = vmatmul.mubr.bf16.gmra.mrb[8].mxu1 %v674_v22 }
  0x33   :  { %237 = vmatprep.mubr.bf16.mxu0 %v676_v1  ;;  %277 = vmatprep.mubr.bf16.mxu1 %v676_v1 }
  0x3a   :  { %238 = vmatmul.mubr.bf16.gmra.mrb[12].mxu0 %v673_v23  ;;  %278 = vmatmul.mubr.bf16.gmra.mrb[12].mxu1 %v675_v24 }
  0xf5   :  { %v209_v25 = vpop.f32.mrb[0].mxu0  ;;  %v783_v26 = vpop.f32.mrb[0].mxu1 }
  0xf6   :  { %v211_v27 = vpop.f32.mrb[1].mxu0  ;;  %v785_v28 = vpop.f32.mrb[1].mxu1  ;;  %v465_v33 = vmul.f32 %v209_v25, %v209_v25 }
  0xf7   :  { %v610_v29 = vpack.c.bf16 %v211_v27, %v209_v25  ;;  %v213_v30 = vpop.f32.mrb[2].mxu0  ;;  %v618_v31 = vpack.c.bf16 %v785_v28, %v783_v26  ;;  %v789_v32 = vpop.f32.mrb[2].mxu1  ;;  %v466_v34 = vmul.f32 %v211_v27, %v211_v27 }
  0xf8   :  { %v400_v35 = vadd.f32 %v213_v30, %v209_v25  ;;  %v467_v36 = vmul.f32 %v213_v30, %v213_v30  ;;  %v215_v37 = vpop.f32.mrb[3].mxu0  ;;  %v791_v38 = vpop.f32.mrb[3].mxu1 }
  0xf9   :  { %384 = vst [vmem:[%s917_s2] sm:$0xff] %v610_v29  ;;  %v611_v39 = vpack.c.bf16 %v215_v37, %v213_v30  ;;  %v421_v40 = vadd.f32 %v215_v37, %v211_v27  ;;  %v468_v41 = vmul.f32 %v215_v37, %v215_v37  ;;  %392 = vst [vmem:[%s917_s2 + $0x40] sm:$0xff] %v618_v31 }
  0xfa   :  { %v619_v42 = vpack.c.bf16 %v791_v38, %v789_v32  ;;  %v497_v43 = vadd.f32 %v467_v36, %v465_v33 }
  0xfb   :  { %385 = vst [vmem:[%s917_s2 + $0x8] sm:$0xff] %v611_v39  ;;  %v518_v44 = vadd.f32 %v468_v41, %v466_v34 }
  0xfc   :  { %393 = vst [vmem:[%s917_s2 + $0x48] sm:$0xff] %v619_v42 }
  0xfd   :  { %v219_v45 = vpop.f32.mrb[4].mxu0  ;;  %v807_v46 = vpop.f32.mrb[4].mxu1 }
  0xfe   :  { %v401_v47 = vadd.f32 %v400_v35, %v219_v45  ;;  %v469_v48 = vmul.f32 %v219_v45, %v219_v45  ;;  %v221_v49 = vpop.f32.mrb[5].mxu0  ;;  %v809_v50 = vpop.f32.mrb[5].mxu1 }
  0xff   :  { %v612_v51 = vpack.c.bf16 %v221_v49, %v219_v45  ;;  %v422_v52 = vadd.f32 %v421_v40, %v221_v49  ;;  %v470_v53 = vmul.f32 %v221_v49, %v221_v49  ;;  %v223_v54 = vpop.f32.mrb[6].mxu0  ;;  %v620_v55 = vpack.c.bf16 %v809_v50, %v807_v46  ;;  %v813_v56 = vpop.f32.mrb[6].mxu1 }
 0x100   :  { %v498_v57 = vadd.f32 %v497_v43, %v469_v48  ;;  %v402_v58 = vadd.f32 %v401_v47, %v223_v54  ;;  %v471_v59 = vmul.f32 %v223_v54, %v223_v54  ;;  %v225_v60 = vpop.f32.mrb[7].mxu0  ;;  %v815_v61 = vpop.f32.mrb[7].mxu1 }
 0x101   :  { %386 = vst [vmem:[%s917_s2 + $0x10] sm:$0xff] %v612_v51  ;;  %v519_v62 = vadd.f32 %v518_v44, %v470_v53  ;;  %v613_v63 = vpack.c.bf16 %v225_v60, %v223_v54  ;;  %v423_v0 = vadd.f32 %v422_v52, %v225_v60  ;;  %v472_v1 = vmul.f32 %v225_v60, %v225_v60 }
 0x102   :  { %394 = vst [vmem:[%s917_s2 + $0x50] sm:$0xff] %v620_v55  ;;  %v499_v2 = vadd.f32 %v498_v57, %v471_v59  ;;  %v621_v3 = vpack.c.bf16 %v815_v61, %v813_v56  ;;  %v481_v57 = vmul.f32 %v783_v26, %v783_v26 }
 0x103   :  { %387 = vst [vmem:[%s917_s2 + $0x18] sm:$0xff] %v613_v63  ;;  %v520_v4 = vadd.f32 %v519_v62, %v472_v1  ;;  %v482_v62 = vmul.f32 %v785_v28, %v785_v28  ;;  %v483_v1 = vmul.f32 %v789_v32, %v789_v32 }
 0x104   :  { %395 = vst [vmem:[%s917_s2 + $0x58] sm:$0xff] %v621_v3 }
 0x105   :  { %v229_v5 = vpop.f32.mrb[8].mxu0  ;;  %v831_v6 = vpop.f32.mrb[8].mxu1 }
 0x106   :  { %v403_v7 = vadd.f32 %v402_v58, %v229_v5  ;;  %v473_v8 = vmul.f32 %v229_v5, %v229_v5  ;;  %v231_v9 = vpop.f32.mrb[9].mxu0  ;;  %v833_v10 = vpop.f32.mrb[9].mxu1 }
 0x107   :  { %v614_v11 = vpack.c.bf16 %v231_v9, %v229_v5  ;;  %v424_v12 = vadd.f32 %v423_v0, %v231_v9  ;;  %v474_v13 = vmul.f32 %v231_v9, %v231_v9  ;;  %v233_v14 = vpop.f32.mrb[10].mxu0  ;;  %v622_v15 = vpack.c.bf16 %v833_v10, %v831_v6  ;;  %v837_v16 = vpop.f32.mrb[10].mxu1 }
 0x108   :  { %v500_v17 = vadd.f32 %v499_v2, %v473_v8  ;;  %v404_v18 = vadd.f32 %v403_v7, %v233_v14  ;;  %v475_v19 = vmul.f32 %v233_v14, %v233_v14  ;;  %v235_v20 = vpop.f32.mrb[11].mxu0  ;;  %v839_v21 = vpop.f32.mrb[11].mxu1 }
 0x109   :  { %388 = vst [vmem:[%s917_s2 + $0x20] sm:$0xff] %v614_v11  ;;  %v521_v22 = vadd.f32 %v520_v4, %v474_v13  ;;  %v615_v23 = vpack.c.bf16 %v235_v20, %v233_v14  ;;  %v425_v24 = vadd.f32 %v424_v12, %v235_v20  ;;  %v476_v25 = vmul.f32 %v235_v20, %v235_v20 }
 0x10a   :  { %396 = vst [vmem:[%s917_s2 + $0x60] sm:$0xff] %v622_v15  ;;  %v501_v27 = vadd.f32 %v500_v17, %v475_v19  ;;  %v623_v29 = vpack.c.bf16 %v839_v21, %v837_v16  ;;  %v487_v12 = vmul.f32 %v813_v56, %v813_v56  ;;  %v490_v20 = vmul.f32 %v833_v10, %v833_v10 }
 0x10b   :  { %389 = vst [vmem:[%s917_s2 + $0x28] sm:$0xff] %v615_v23  ;;  %v522_v30 = vadd.f32 %v521_v22, %v476_v25 }
 0x10c   :  { %397 = vst [vmem:[%s917_s2 + $0x68] sm:$0xff] %v623_v29 }
 0x10d   :  { %v239_v31 = vpop.f32.mrb[12].mxu0  ;;  %v855_v33 = vpop.f32.mrb[12].mxu1 }
 0x10e   :  { %v405_v34 = vadd.f32 %v404_v18, %v239_v31  ;;  %v477_v35 = vmul.f32 %v239_v31, %v239_v31  ;;  %v241_v36 = vpop.f32.mrb[13].mxu0  ;;  %v281_v37 = vpop.f32.mrb[13].mxu1  ;;  %v489_v18 = vmul.f32 %v831_v6, %v831_v6 }
 0x10f   :  { %v616_v39 = vpack.c.bf16 %v241_v36, %v239_v31  ;;  %v426_v40 = vadd.f32 %v425_v24, %v241_v36  ;;  %v478_v41 = vmul.f32 %v241_v36, %v241_v36  ;;  %v243_v42 = vpop.f32.mrb[14].mxu0  ;;  %v624_v43 = vpack.c.bf16 %v281_v37, %v855_v33  ;;  %v283_v44 = vpop.f32.mrb[14].mxu1 }
 0x110   :  { %v502_v45 = vadd.f32 %v501_v27, %v477_v35  ;;  %v406_v47 = vadd.f32 %v405_v34, %v243_v42  ;;  %v479_v48 = vmul.f32 %v243_v42, %v243_v42  ;;  %v245_v49 = vpop.f32.mrb[15].mxu0  ;;  %v285_v51 = vpop.f32.mrb[15].mxu1  ;;  %v491_v24 = vmul.f32 %v837_v16, %v837_v16 }
 0x111   :  { %390 = vst [vmem:[%s917_s2 + $0x30] sm:$0xff] %v616_v39  ;;  %v523_v52 = vadd.f32 %v522_v30, %v478_v41  ;;  %v617_v53 = vpack.c.bf16 %v245_v49, %v243_v42  ;;  %v427_v54 = vadd.f32 %v426_v40, %v245_v49  ;;  %v480_v55 = vmul.f32 %v245_v49, %v245_v49 }
 0x112   :  { %398 = vst [vmem:[%s917_s2 + $0x70] sm:$0xff] %v624_v43  ;;  %v407_v58 = vadd.f32 %v406_v47, %v783_v26  ;;  %v503_v59 = vadd.f32 %v502_v45, %v479_v48  ;;  %v625_v60 = vpack.c.bf16 %v285_v51, %v283_v44  ;;  %v484_v26 = vmul.f32 %v791_v38, %v791_v38 }
 0x113   :  { %391 = vst [vmem:[%s917_s2 + $0x38] sm:$0xff] %v617_v53  ;;  %v428_v63 = vadd.f32 %v427_v54, %v785_v28  ;;  %v524_v0 = vadd.f32 %v523_v52, %v480_v55  ;;  %v485_v28 = vmul.f32 %v807_v46, %v807_v46  ;;  %v494_v29 = vmul.f32 %v281_v37, %v281_v37 }
 0x114   :  { %v408_v2 = vadd.f32 %v407_v58, %v789_v32  ;;  %v504_v3 = vadd.f32 %v503_v59, %v481_v57  ;;  %399 = vst [vmem:[%s917_s2 + $0x78] sm:$0xff] %v625_v60  ;;  %v486_v32 = vmul.f32 %v809_v50, %v809_v50  ;;  %v495_v39 = vmul.f32 %v283_v44, %v283_v44 }
 0x115   :  { %v429_v4 = vadd.f32 %v428_v63, %v791_v38  ;;  %v525_v5 = vadd.f32 %v524_v0, %v482_v62  ;;  %v488_v38 = vmul.f32 %v815_v61, %v815_v61  ;;  %v496_v41 = vmul.f32 %v285_v51, %v285_v51 }
 0x116   :  { %v505_v7 = vadd.f32 %v504_v3, %v483_v1  ;;  %v409_v8 = vadd.f32 %v408_v2, %v807_v46  ;;  %v448_v54 = vlaneseq }
 0x117   :  { %v526_v9 = vadd.f32 %v525_v5, %v484_v26  ;;  %v430_v11 = vadd.f32 %v429_v4, %v809_v50 }
 0x118   :  { %v410_v13 = vadd.f32 %v409_v8, %v813_v56  ;;  %v506_v14 = vadd.f32 %v505_v7, %v485_v28  ;;  %vm462_vm0 = vcmp.lt.s32.totalorder %v448_v54, 256 }
 0x119   :  { %v431_v15 = vadd.f32 %v430_v11, %v815_v61  ;;  %v527_v17 = vadd.f32 %v526_v9, %v486_v32  ;;  %v493_v61 = vmul.f32 %v855_v33, %v855_v33 }
 0x11a   :  { %v411_v46 = vadd.f32 %v410_v13, %v831_v6  ;;  %v507_v19 = vadd.f32 %v506_v14, %v487_v12  ;;  %v492_v6 = vmul.f32 %v839_v21, %v839_v21 }
 0x11b   :  { %v432_v50 = vadd.f32 %v431_v15, %v833_v10  ;;  %v528_v22 = vadd.f32 %v527_v17, %v488_v38 }
 0x11c   :  { %v508_v56 = vadd.f32 %v507_v19, %v489_v18  ;;  %v412_v23 = vadd.f32 %v411_v46, %v837_v16 }
 0x11d   :  { %v529_v25 = vadd.f32 %v528_v22, %v490_v20  ;;  %v433_v27 = vadd.f32 %v432_v50, %v839_v21  ;;  %v677_v21 = vmov 1966171168  }
 0x11e   :  { %v509_v30 = vadd.f32 %v508_v56, %v491_v24  ;;  %v413_v10 = vadd.f32 %v412_v23, %v855_v33  ;;  %v446_v53 = vunpack.c.l.s4 %v677_v21 }
 0x11f   :  { %v530_v31 = vadd.f32 %v529_v25, %v492_v6  ;;  %v434_v34 = vadd.f32 %v433_v27, %v281_v37 }
 0x120   :  { %v510_v35 = vadd.f32 %v509_v30, %v493_v61  ;;  %v414_v36 = vadd.f32 %v413_v10, %v283_v44  ;;  %v447_v62 = vunpack.c.0.s8 %v446_v53 }
 0x121   :  { %v531_v40 = vadd.f32 %v530_v31, %v494_v29  ;;  %v435_v16 = vadd.f32 %v434_v34, %v285_v51  ;;  %v449_v51 = vshrl.u32 %v448_v54, 7 }
 0x122   :  { %v415_v42 = vrot.slane %v414_v36, 4  ;;  %v511_v43 = vadd.f32 %v510_v35, %v495_v39 }
 0x123   :  { %v436_v45 = vrot.slane %v435_v16, 4  ;;  %v532_v47 = vadd.f32 %v531_v40, %v496_v41  ;;  %v450_v28 = vsub.s32 %v447_v62, %v449_v51 }
 0x124   :  { %v416_v48 = vadd.f32 %v415_v42, %v414_v36  ;;  %v512_v49 = vrot.slane %v511_v43, 4 }
 0x125   :  { %v437_v52 = vadd.f32 %v436_v45, %v435_v16  ;;  %v533_v55 = vrot.slane %v532_v47, 4 }
 0x126   :  { %v417_v33 = vrot.slane %v416_v48, 2  ;;  %v513_v57 = vadd.f32 %v512_v49, %v511_v43 }
 0x127   :  { %v438_v37 = vrot.slane %v437_v52, 2  ;;  %v534_v58 = vadd.f32 %v533_v55, %v532_v47 }
 0x128   :  { %v418_v59 = vadd.f32 %v417_v33, %v416_v48  ;;  %v514_v44 = vrot.slane %v513_v57, 2 }
 0x129   :  { %v439_v60 = vadd.f32 %v438_v37, %v437_v52  ;;  %v535_v63 = vrot.slane %v534_v58, 2 }
 0x12a   :  { %v419_v0 = vrot.slane %v418_v59, 1  ;;  %v515_v1 = vadd.f32 %v514_v44, %v513_v57 }
 0x12b   :  { %v440_v2 = vrot.slane %v439_v60, 1  ;;  %v536_v3 = vadd.f32 %v535_v63, %v534_v58 }
 0x12c   :  { %v420_v26 = vadd.f32 %v419_v0, %v418_v59  ;;  %v516_v4 = vrot.slane %v515_v1, 1 }
 0x12d   :  { %v441_v5 = vadd.f32 %v440_v2, %v439_v60  ;;  %v537_v7 = vrot.slane %v536_v3, 1 }
 0x12e   :  { %v517_v8 = vadd.f32 %v516_v4, %v515_v1 }
 0x12f   :  { %v444_v32 = vcombine.low %v420_v26, %v441_v5  ;;  %v538_v9 = vadd.f32 %v537_v7, %v536_v3 }
 0x131   :  { %v451_v11 = vrot.slane %v444_v32, %v450_v28  ;;  %v541_v12 = vcombine.low %v517_v8, %v538_v9 }
 0x133   :  { %v458_v13 = vrot.slane %v451_v11, %v450_v28  ;;  %v548_v14 = vrot.slane %v541_v12, %v450_v28 }
 0x135   :  { %464 = vst.msk [vmem:[%s918_s3] sm:$0x3] %vm462_vm0, %v458_v13  ;;  %v555_v38 = vrot.slane %v548_v14, %v450_v28 }
 0x137   :  { %557 = vst.msk [vmem:[%s919_s4] sm:$0x3] %vm462_vm0, %v555_v38 }

// kernel: resblock_forward.7
= control target key start
LH: loop header
LB: loop body
LE: loop exit
PB: predicated region body
PF: predicated region fallthrough
CT: control target
= control target key end

     0   :  { %s690_s0 = inlined_call_operand.vmem [shape: bf16[128,128], index: 0, kind: input, shape index: {}]   ;;  %s691_s1 = inlined_call_operand.vmem [shape: f32[1,128], index: 1, kind: input, shape index: {}]   ;;  %s692_s2 = inlined_call_operand.vmem [shape: f32[1,128], index: 2, kind: input, shape index: {}]   ;;  %s693_s3 = inlined_call_operand.vmem [shape: bf16[128,256], index: 3, kind: input, shape index: {}]   ;;  %s694_s4 = inlined_call_operand.vmem [shape: f32[1,128], index: 4, kind: input, shape index: {}]   ;;  %s695_s5 = inlined_call_operand.vmem [shape: f32[1,128], index: 5, kind: input, shape index: {}]   ;;  %s696_s6 = inlined_call_operand.vmem [shape: f32[128,128], index: 6, kind: output, shape index: {}]  }
   0x1   :  { %v353_v0 = vld [vmem:[%s693_s3 + $0x4] sm:$0xf]  ;;  %v354_v1 = vld [vmem:[%s693_s3 + $0xc] sm:$0xf]  ;;  %v355_v2 = vld [vmem:[%s693_s3 + $0x14] sm:$0xf] }
   0x2   :  { %36 = vst [vmem:[#allocation2] sm:$0xf] %v353_v0  ;;  %38 = vst [vmem:[#allocation2 + $0x4] sm:$0xf] %v354_v1  ;;  %v356_v3 = vld [vmem:[%s693_s3 + $0x1c] sm:$0xf] }
   0x3   :  { %40 = vst [vmem:[#allocation2 + $0x8] sm:$0xf] %v355_v2  ;;  %v357_v4 = vld [vmem:[%s693_s3 + $0x24] sm:$0xf]  ;;  %v358_v5 = vld [vmem:[%s693_s3 + $0x2c] sm:$0xf] }
   0x4   :  { %42 = vst [vmem:[#allocation2 + $0xc] sm:$0xf] %v356_v3  ;;  %44 = vst [vmem:[#allocation2 + $0x10] sm:$0xf] %v357_v4  ;;  %v359_v6 = vld [vmem:[%s693_s3 + $0x34] sm:$0xf] }
   0x5   :  { %46 = vst [vmem:[#allocation2 + $0x14] sm:$0xf] %v358_v5  ;;  %v360_v7 = vld [vmem:[%s693_s3 + $0x3c] sm:$0xf]  ;;  %v361_v8 = vld [vmem:[%s693_s3 + $0x44] sm:$0xf] }
   0x6   :  { %48 = vst [vmem:[#allocation2 + $0x18] sm:$0xf] %v359_v6  ;;  %50 = vst [vmem:[#allocation2 + $0x1c] sm:$0xf] %v360_v7  ;;  %v362_v9 = vld [vmem:[%s693_s3 + $0x4c] sm:$0xf] }
   0x7   :  { %52 = vst [vmem:[#allocation2 + $0x20] sm:$0xf] %v361_v8  ;;  %v363_v10 = vld [vmem:[%s693_s3 + $0x54] sm:$0xf]  ;;  %v364_v11 = vld [vmem:[%s693_s3 + $0x5c] sm:$0xf] }
   0x8   :  { %54 = vst [vmem:[#allocation2 + $0x24] sm:$0xf] %v362_v9  ;;  %56 = vst [vmem:[#allocation2 + $0x28] sm:$0xf] %v363_v10  ;;  %v365_v12 = vld [vmem:[%s693_s3 + $0x64] sm:$0xf] }
   0x9   :  { %58 = vst [vmem:[#allocation2 + $0x2c] sm:$0xf] %v364_v11  ;;  %v366_v13 = vld [vmem:[%s693_s3 + $0x6c] sm:$0xf]  ;;  %v367_v14 = vld [vmem:[%s693_s3 + $0x74] sm:$0xf] }
   0xa   :  { %60 = vst [vmem:[#allocation2 + $0x30] sm:$0xf] %v365_v12  ;;  %62 = vst [vmem:[#allocation2 + $0x34] sm:$0xf] %v366_v13  ;;  %v368_v15 = vld [vmem:[%s693_s3 + $0x7c] sm:$0xf] }
   0xb   :  { %64 = vst [vmem:[#allocation2 + $0x38] sm:$0xf] %v367_v14  ;;  %v374_v16 = vld [vmem:[%s690_s0] sm:$0xff]   ;;  %66 = vst [vmem:[#allocation2 + $0x3c] sm:$0xf] %v368_v15  ;;  %v437_v21 = vld [vmem:[%s690_s0 + $0x8] sm:$0xff]  }
   0xc   :  { %v540_v17 = vld [vmem:[%s691_s1] ss:$0 sm:$0xff]  ;;  %v375_v18 = vunpack.c.l.bf16 %v374_v16  ;;  %v376_v19 = vunpack.c.h.bf16 %v374_v16  ;;  %v438_v22 = vld [vmem:[%s690_s0 + $0x10] sm:$0xff]   ;;  %v379_v27 = vunpack.c.l.bf16 %v437_v21  ;;  %v380_v28 = vunpack.c.h.bf16 %v437_v21  ;;  %v444_v31 = vld [vmem:[#allocation2 + $0x8] sm:$0xff]  }
   0xd   :  { %v545_v20 = vld [vmem:[%s692_s2] ss:$0 sm:$0xff]  ;;  %v383_v32 = vunpack.c.l.bf16 %v438_v22  ;;  %v384_v33 = vunpack.c.h.bf16 %v438_v22  ;;  %v411_v38 = vunpack.c.l.bf16 %v444_v31  ;;  %v412_v42 = vunpack.c.h.bf16 %v444_v31  ;;  %v445_v43 = vld [vmem:[#allocation2 + $0x10] sm:$0xff]   ;;  %v439_v0 = vld [vmem:[%s690_s0 + $0x18] sm:$0xff]  }
   0xe   :  { %v164_v23 = vmul.f32 %v375_v18, %v540_v17  ;;  %v406_v24 = vld [vmem:[#allocation2] sm:$0xff]   ;;  %v165_v26 = vmul.f32 %v376_v19, %v540_v17  ;;  %v166_v37 = vmul.f32 %v379_v27, %v540_v17  ;;  %v167_v41 = vmul.f32 %v380_v28, %v540_v17  ;;  %v446_v1 = vld [vmem:[#allocation2 + $0x18] sm:$0xff]  }
   0xf   :  { %v557_v25 = vld [vmem:[%s694_s4] ss:$0 sm:$0xff]  ;;  %v407_v29 = vunpack.c.l.bf16 %v406_v24  ;;  %v408_v30 = vunpack.c.h.bf16 %v406_v24  ;;  %v168_v54 = vmul.f32 %v383_v32, %v540_v17  ;;  %v415_v55 = vunpack.c.l.bf16 %v445_v43 }
  0x10   :  { %v187_v34 = vadd.f32 %v545_v20, %v164_v23  ;;  %v564_v35 = vld [vmem:[%s695_s5] ss:$0 sm:$0xff]  ;;  %v188_v36 = vadd.f32 %v545_v20, %v165_v26  ;;  %v189_v46 = vadd.f32 %v545_v20, %v166_v37  ;;  %v260_v47 = vmul.f32 %v411_v38, %v557_v25 }
  0x11   :  { %v258_v39 = vmul.f32 %v407_v29, %v557_v25  ;;  %v259_v40 = vmul.f32 %v408_v30, %v557_v25  ;;  %v190_v50 = vadd.f32 %v545_v20, %v167_v41  ;;  %v261_v51 = vmul.f32 %v412_v42, %v557_v25  ;;  %v440_v10 = vld [vmem:[%s690_s0 + $0x20] sm:$0xff]   ;;  %v448_v41 = vld [vmem:[#allocation2 + $0x28] sm:$0xff]  }
  0x12   :  { %v203_v44 = vmax.f32 %v187_v34, 0.0  ;;  %v204_v45 = vmax.f32 %v188_v36, 0.0  ;;  %v205_v52 = vmax.f32 %v189_v46, 0.0  ;;  %v283_v53 = vadd.f32 %v564_v35, %v260_v47  ;;  %v447_v15 = vld [vmem:[#allocation2 + $0x20] sm:$0xff]   ;;  %v441_v36 = vld [vmem:[%s690_s0 + $0x28] sm:$0xff]  }
  0x13   :  { %v281_v48 = vadd.f32 %v564_v35, %v258_v39  ;;  %v282_v49 = vadd.f32 %v564_v35, %v259_v40  ;;  %v206_v58 = vmax.f32 %v190_v50, 0.0  ;;  %v284_v59 = vadd.f32 %v564_v35, %v261_v51 }
  0x14   :  { %v299_v60 = vadd.f32 %v283_v53, %v205_v52  ;;  %v191_v61 = vadd.f32 %v545_v20, %v168_v54  ;;  %v262_v62 = vmul.f32 %v415_v55, %v557_v25  ;;  %v169_v63 = vmul.f32 %v384_v33, %v540_v17 }
  0x15   :  { %v297_v56 = vadd.f32 %v281_v48, %v203_v44  ;;  %v298_v57 = vadd.f32 %v282_v49, %v204_v45  ;;  %v300_v4 = vadd.f32 %v284_v59, %v206_v58  ;;  %v416_v5 = vunpack.c.h.bf16 %v445_v43  ;;  %v442_v58 = vld [vmem:[%s690_s0 + $0x30] sm:$0xff]  }
  0x16   :  { %v315_v6 = vmax.f32 %v299_v60, 0.0  ;;  %v207_v7 = vmax.f32 %v191_v61, 0.0  ;;  %v285_v8 = vadd.f32 %v564_v35, %v262_v62  ;;  %v192_v9 = vadd.f32 %v545_v20, %v169_v63  ;;  %v449_v63 = vld [vmem:[#allocation2 + $0x30] sm:$0xff]  }
  0x17   :  { %v313_v2 = vmax.f32 %v297_v56, 0.0  ;;  %v314_v3 = vmax.f32 %v298_v57, 0.0  ;;  %v316_v11 = vmax.f32 %v300_v4, 0.0  ;;  %v263_v12 = vmul.f32 %v416_v5, %v557_v25 }
  0x18   :  { %v387_v13 = vunpack.c.l.bf16 %v439_v0  ;;  %v419_v14 = vunpack.c.l.bf16 %v446_v1  ;;  %331 = vst [vmem:[%s696_s6 + $0x10] sm:$0xff] %v315_v6  ;;  %v301_v16 = vadd.f32 %v285_v8, %v207_v7  ;;  %v208_v18 = vmax.f32 %v192_v9, 0.0 }
  0x19   :  { %329 = vst [vmem:[%s696_s6] sm:$0xff] %v313_v2  ;;  %330 = vst [vmem:[%s696_s6 + $0x8] sm:$0xff] %v314_v3  ;;  %v388_v19 = vunpack.c.h.bf16 %v439_v0  ;;  %v420_v21 = vunpack.c.h.bf16 %v446_v1  ;;  %v286_v22 = vadd.f32 %v564_v35, %v263_v12  ;;  %v391_v26 = vunpack.c.l.bf16 %v440_v10 }
  0x1a   :  { %332 = vst [vmem:[%s696_s6 + $0x18] sm:$0xff] %v316_v11  ;;  %v170_v23 = vmul.f32 %v387_v13, %v540_v17  ;;  %v264_v24 = vmul.f32 %v419_v14, %v557_v25  ;;  %v317_v27 = vmax.f32 %v301_v16, 0.0  ;;  %v423_v30 = vunpack.c.l.bf16 %v447_v15  ;;  %v443_v16 = vld [vmem:[%s690_s0 + $0x38] sm:$0xff]  }
  0x1b   :  { %v171_v28 = vmul.f32 %v388_v19, %v540_v17  ;;  %v265_v29 = vmul.f32 %v420_v21, %v557_v25  ;;  %v302_v31 = vadd.f32 %v286_v22, %v208_v18  ;;  %v172_v34 = vmul.f32 %v391_v26, %v540_v17  ;;  %v450_v18 = vld [vmem:[#allocation2 + $0x38] sm:$0xff]  }
  0x1c   :  { %v193_v32 = vadd.f32 %v545_v20, %v170_v23  ;;  %v287_v33 = vadd.f32 %v564_v35, %v264_v24  ;;  %333 = vst [vmem:[%s696_s6 + $0x20] sm:$0xff] %v317_v27  ;;  %v266_v39 = vmul.f32 %v423_v30, %v557_v25  ;;  %v392_v40 = vunpack.c.h.bf16 %v440_v10 }
  0x1d   :  { %v194_v37 = vadd.f32 %v545_v20, %v171_v28  ;;  %v288_v38 = vadd.f32 %v564_v35, %v265_v29  ;;  %v318_v42 = vmax.f32 %v302_v31, 0.0  ;;  %v195_v44 = vadd.f32 %v545_v20, %v172_v34 }
  0x1e   :  { %v209_v43 = vmax.f32 %v193_v32, 0.0  ;;  %v424_v45 = vunpack.c.h.bf16 %v447_v15  ;;  %v289_v47 = vadd.f32 %v564_v35, %v266_v39  ;;  %v173_v48 = vmul.f32 %v392_v40, %v540_v17 }
  0x1f   :  { %v210_v46 = vmax.f32 %v194_v37, 0.0  ;;  %v395_v49 = vunpack.c.l.bf16 %v441_v36  ;;  %334 = vst [vmem:[%s696_s6 + $0x28] sm:$0xff] %v318_v42  ;;  %v211_v51 = vmax.f32 %v195_v44, 0.0  ;;  %v427_v53 = vunpack.c.l.bf16 %v448_v41 }
  0x20   :  { %v303_v50 = vadd.f32 %v287_v33, %v209_v43  ;;  %v267_v52 = vmul.f32 %v424_v45, %v557_v25  ;;  %v196_v55 = vadd.f32 %v545_v20, %v173_v48  ;;  %v396_v57 = vunpack.c.h.bf16 %v441_v36 }
  0x21   :  { %v304_v54 = vadd.f32 %v288_v38, %v210_v46  ;;  %v174_v56 = vmul.f32 %v395_v49, %v540_v17  ;;  %v305_v60 = vadd.f32 %v289_v47, %v211_v51  ;;  %v268_v62 = vmul.f32 %v427_v53, %v557_v25 }
  0x22   :  { %v319_v59 = vmax.f32 %v303_v50, 0.0  ;;  %v290_v61 = vadd.f32 %v564_v35, %v267_v52  ;;  %v212_v1 = vmax.f32 %v196_v55, 0.0  ;;  %v175_v3 = vmul.f32 %v396_v57, %v540_v17 }
  0x23   :  { %v320_v0 = vmax.f32 %v304_v54, 0.0  ;;  %v197_v2 = vadd.f32 %v545_v20, %v174_v56  ;;  %v321_v4 = vmax.f32 %v305_v60, 0.0  ;;  %v291_v5 = vadd.f32 %v564_v35, %v268_v62 }
  0x24   :  { %335 = vst [vmem:[%s696_s6 + $0x30] sm:$0xff] %v319_v59  ;;  %v428_v6 = vunpack.c.h.bf16 %v448_v41  ;;  %v399_v7 = vunpack.c.l.bf16 %v442_v58  ;;  %v306_v8 = vadd.f32 %v290_v61, %v212_v1  ;;  %v198_v10 = vadd.f32 %v545_v20, %v175_v3 }
  0x25   :  { %336 = vst [vmem:[%s696_s6 + $0x38] sm:$0xff] %v320_v0  ;;  %v213_v9 = vmax.f32 %v197_v2, 0.0  ;;  %v431_v11 = vunpack.c.l.bf16 %v449_v63  ;;  %337 = vst [vmem:[%s696_s6 + $0x40] sm:$0xff] %v321_v4  ;;  %v400_v14 = vunpack.c.h.bf16 %v442_v58  ;;  %v432_v15 = vunpack.c.h.bf16 %v449_v63 }
  0x26   :  { %v269_v12 = vmul.f32 %v428_v6, %v557_v25  ;;  %v176_v13 = vmul.f32 %v399_v7, %v540_v17  ;;  %v322_v19 = vmax.f32 %v306_v8, 0.0  ;;  %v214_v22 = vmax.f32 %v198_v10, 0.0 }
  0x27   :  { %v307_v21 = vadd.f32 %v291_v5, %v213_v9  ;;  %v270_v23 = vmul.f32 %v431_v11, %v557_v25  ;;  %v177_v27 = vmul.f32 %v400_v14, %v540_v17  ;;  %v271_v28 = vmul.f32 %v432_v15, %v557_v25 }
  0x28   :  { %v292_v24 = vadd.f32 %v564_v35, %v269_v12  ;;  %v199_v26 = vadd.f32 %v545_v20, %v176_v13  ;;  %338 = vst [vmem:[%s696_s6 + $0x48] sm:$0xff] %v322_v19  ;;  %v403_v31 = vunpack.c.l.bf16 %v443_v16  ;;  %v435_v32 = vunpack.c.l.bf16 %v450_v18 }
  0x29   :  { %v323_v29 = vmax.f32 %v307_v21, 0.0  ;;  %v293_v30 = vadd.f32 %v564_v35, %v270_v23  ;;  %v200_v36 = vadd.f32 %v545_v20, %v177_v27  ;;  %v294_v37 = vadd.f32 %v564_v35, %v271_v28 }
  0x2a   :  { %v308_v33 = vadd.f32 %v292_v24, %v214_v22  ;;  %v215_v34 = vmax.f32 %v199_v26, 0.0  ;;  %v178_v38 = vmul.f32 %v403_v31, %v540_v17  ;;  %v272_v39 = vmul.f32 %v435_v32, %v557_v25 }
  0x2b   :  { %339 = vst [vmem:[%s696_s6 + $0x50] sm:$0xff] %v323_v29  ;;  %v404_v40 = vunpack.c.h.bf16 %v443_v16  ;;  %v436_v41 = vunpack.c.h.bf16 %v450_v18  ;;  %v216_v44 = vmax.f32 %v200_v36, 0.0 }
  0x2c   :  { %v324_v42 = vmax.f32 %v308_v33, 0.0  ;;  %v309_v43 = vadd.f32 %v293_v30, %v215_v34  ;;  %v201_v45 = vadd.f32 %v545_v20, %v178_v38  ;;  %v295_v46 = vadd.f32 %v564_v35, %v272_v39 }
  0x2d   :  { %v179_v47 = vmul.f32 %v404_v40, %v540_v17  ;;  %v273_v48 = vmul.f32 %v436_v41, %v557_v25  ;;  %v310_v50 = vadd.f32 %v294_v37, %v216_v44 }
  0x2e   :  { %340 = vst [vmem:[%s696_s6 + $0x58] sm:$0xff] %v324_v42  ;;  %v325_v49 = vmax.f32 %v309_v43, 0.0  ;;  %v217_v51 = vmax.f32 %v201_v45, 0.0 }
  0x2f   :  { %v202_v52 = vadd.f32 %v545_v20, %v179_v47  ;;  %v296_v53 = vadd.f32 %v564_v35, %v273_v48  ;;  %v326_v54 = vmax.f32 %v310_v50, 0.0 }
  0x30   :  { %341 = vst [vmem:[%s696_s6 + $0x60] sm:$0xff] %v325_v49  ;;  %v311_v55 = vadd.f32 %v295_v46, %v217_v51 }
  0x31   :  { %v218_v17 = vmax.f32 %v202_v52, 0.0  ;;  %342 = vst [vmem:[%s696_s6 + $0x68] sm:$0xff] %v326_v54 }
  0x32   :  { %v327_v25 = vmax.f32 %v311_v55, 0.0 }
  0x33   :  { %v312_v56 = vadd.f32 %v296_v53, %v218_v17 }
  0x34   :  { %343 = vst [vmem:[%s696_s6 + $0x70] sm:$0xff] %v327_v25 }
  0x35   :  { %v328_v20 = vmax.f32 %v312_v56, 0.0 }
  0x37   :  { %344 = vst [vmem:[%s696_s6 + $0x78] sm:$0xff] %v328_v20 }

// kernel: resblock_forward.6
= control target key start
LH: loop header
LB: loop body
LE: loop exit
PB: predicated region body
PF: predicated region fallthrough
CT: control target
= control target key end

     0   :  { %s670_s1 = inlined_call_operand.vmem [shape: bf16[128,128], index: 1, kind: input, shape index: {}]   ;;  %s671_s0 = inlined_call_operand.vmem [shape: bf16[128,128], index: 0, kind: input, shape index: {}]   ;;  %s672_s2 = inlined_call_operand.vmem [shape: bf16[128,128], index: 2, kind: output, shape index: {0}]   ;;  %s673_s3 = inlined_call_operand.vmem [shape: f32[1,1,128], index: 3, kind: output, shape index: {1}]   ;;  %s674_s4 = inlined_call_operand.vmem [shape: f32[1,1,128], index: 4, kind: output, shape index: {2}]  }
   0x1   :  { %v551_v0 = vld [vmem:[%s670_s1] sm:$0xff]   ;;  %v552_v1 = vld [vmem:[%s670_s1 + $0x8] sm:$0xff]   ;;  %v553_v2 = vld [vmem:[%s670_s1 + $0x10] sm:$0xff]  }
   0x2   :  { %503 = vmatprep.subr.bf16.mxu0 %v551_v0  ;;  %535 = vmatprep.subr.bf16.mxu1 %v551_v0  ;;  %v554_v3 = vld [vmem:[%s670_s1 + $0x18] sm:$0xff]   ;;  %v559_v4 = vld [vmem:[%s671_s0] sm:$0xff]   ;;  %v556_v7 = vld [vmem:[%s670_s1 + $0x28] sm:$0xff]  }
   0x3   :  { %504 = vmatpush3.bf16.msra.mxu0 %v551_v0  ;;  %543 = vmatpush3.bf16.msra.mxu1 %v551_v0  ;;  %v555_v5 = vld [vmem:[%s670_s1 + $0x20] sm:$0xff]   ;;  %v557_v8 = vld [vmem:[%s670_s1 + $0x30] sm:$0xff]   ;;  %v558_v9 = vld [vmem:[%s670_s1 + $0x38] sm:$0xff]  }
   0x4   :  { %505 = vmatprep.subr.bf16.mxu0 %v552_v1  ;;  %536 = vmatprep.subr.bf16.mxu1 %v552_v1  ;;  %v563_v6 = vld [vmem:[%s671_s0 + $0x20] sm:$0xff]   ;;  %v560_v10 = vld [vmem:[%s671_s0 + $0x8] sm:$0xff]   ;;  %v561_v12 = vld [vmem:[%s671_s0 + $0x10] sm:$0xff]  }
   0x5   :  { %519 = vmatprep.mubr.bf16.mxu0 %v559_v4  ;;  %527 = vmatprep.mubr.bf16.mxu1 %v563_v6  ;;  %v564_v11 = vld [vmem:[%s671_s0 + $0x28] sm:$0xff]   ;;  %v565_v13 = vld [vmem:[%s671_s0 + $0x30] sm:$0xff]   ;;  %v562_v14 = vld [vmem:[%s671_s0 + $0x18] sm:$0xff]  }
   0x6   :  { %v566_v15 = vld [vmem:[%s671_s0 + $0x38] sm:$0xff]  }
   0x7   :  { %506 = vmatpush3.bf16.msra.mxu0 %v552_v1  ;;  %544 = vmatpush3.bf16.msra.mxu1 %v552_v1 }
   0x8   :  { %507 = vmatprep.subr.bf16.mxu0 %v553_v2  ;;  %537 = vmatprep.subr.bf16.mxu1 %v553_v2 }
   0xb   :  { %508 = vmatpush3.bf16.msra.mxu0 %v553_v2  ;;  %545 = vmatpush3.bf16.msra.mxu1 %v553_v2 }
   0xc   :  { %509 = vmatprep.subr.bf16.mxu0 %v554_v3  ;;  %538 = vmatprep.subr.bf16.mxu1 %v554_v3 }
   0xf   :  { %510 = vmatpush3.bf16.msra.mxu0 %v554_v3  ;;  %546 = vmatpush3.bf16.msra.mxu1 %v554_v3 }
  0x10   :  { %511 = vmatprep.subr.bf16.mxu0 %v555_v5  ;;  %539 = vmatprep.subr.bf16.mxu1 %v555_v5 }
  0x13   :  { %512 = vmatpush3.bf16.msra.mxu0 %v555_v5  ;;  %547 = vmatpush3.bf16.msra.mxu1 %v555_v5 }
  0x14   :  { %513 = vmatprep.subr.bf16.mxu0 %v556_v7  ;;  %540 = vmatprep.subr.bf16.mxu1 %v556_v7 }
  0x17   :  { %514 = vmatpush3.bf16.msra.mxu0 %v556_v7  ;;  %548 = vmatpush3.bf16.msra.mxu1 %v556_v7 }
  0x18   :  { %515 = vmatprep.subr.bf16.mxu0 %v557_v8  ;;  %541 = vmatprep.subr.bf16.mxu1 %v557_v8 }
  0x1b   :  { %516 = vmatpush3.bf16.msra.mxu0 %v557_v8  ;;  %549 = vmatpush3.bf16.msra.mxu1 %v557_v8 }
  0x1c   :  { %517 = vmatprep.subr.bf16.mxu0 %v558_v9  ;;  %542 = vmatprep.subr.bf16.mxu1 %v558_v9 }
  0x1f   :  { %518 = vmatpush3.bf16.msra.mxu0 %v558_v9  ;;  %550 = vmatpush3.bf16.msra.mxu1 %v558_v9 }
  0x22   :  { %520 = vmatmul.mubr.bf16.vlgmr.msra.gmra.mrb[0].mxu0 %v560_v10  ;;  %528 = vmatmul.mubr.bf16.vlgmr.msra.gmra.mrb[0].mxu1 %v564_v11 }
  0x23   :  { %523 = vmatprep.mubr.bf16.mxu0 %v561_v12  ;;  %531 = vmatprep.mubr.bf16.mxu1 %v565_v13 }
  0x2a   :  { %524 = vmatmul.mubr.bf16.gmra.mrb[4].mxu0 %v562_v14  ;;  %532 = vmatmul.mubr.bf16.gmra.mrb[4].mxu1 %v566_v15 }
  0xf5   :  { %v521_v16 = vpop.f32.mrb[0].mxu0  ;;  %v529_v17 = vpop.f32.mrb[0].mxu1 }
  0xf6   :  { %v177_v18 = vpop.f32.mrb[1].mxu0  ;;  %v209_v19 = vpop.f32.mrb[1].mxu1  ;;  %v344_v31 = vmul.f32 %v521_v16, %v521_v16  ;;  %v352_v3 = vmul.f32 %v529_v17, %v529_v17 }
  0xf7   :  { %v522_v20 = vpop.f32.mrb[2].mxu0  ;;  %v530_v21 = vpop.f32.mrb[2].mxu1  ;;  %v342_v22 = vmul.f32 %v177_v18, %v177_v18  ;;  %v350_v61 = vmul.f32 %v209_v19, %v209_v19 }
  0xf8   :  { %v448_v23 = vpack.c.bf16 %v522_v20, %v521_v16  ;;  %v180_v24 = vpop.f32.mrb[3].mxu0  ;;  %v468_v25 = vpack.c.bf16 %v530_v21, %v529_v17  ;;  %v212_v26 = vpop.f32.mrb[3].mxu1  ;;  %v345_v34 = vmul.f32 %v522_v20, %v522_v20  ;;  %v353_v6 = vmul.f32 %v530_v21, %v530_v21 }
  0xf9   :  { %v443_v27 = vpack.c.bf16 %v180_v24, %v177_v18  ;;  %v320_v28 = vadd.f32 %v180_v24, %v177_v18  ;;  %v343_v29 = vmul.f32 %v180_v24, %v180_v24  ;;  %v463_v30 = vpack.c.bf16 %v212_v26, %v209_v19 }
  0xfa   :  { %480 = vst [vmem:[%s672_s2 + $0x8] sm:$0xff] %v448_v23   ;;  %484 = vst [vmem:[%s672_s2 + $0x28] sm:$0xff] %v468_v25   ;;  %v351_v2 = vmul.f32 %v212_v26, %v212_v26 }
  0xfb   :  { %444 = vst [vmem:[%s672_s2] sm:$0xff] %v443_v27   ;;  %v321_v32 = vadd.f32 %v521_v16, %v320_v28  ;;  %v358_v33 = vadd.f32 %v343_v29, %v342_v22  ;;  %483 = vst [vmem:[%s672_s2 + $0x20] sm:$0xff] %v463_v30  }
  0xfd   :  { %v359_v35 = vadd.f32 %v358_v33, %v344_v31  ;;  %v525_v36 = vpop.f32.mrb[4].mxu0  ;;  %v322_v37 = vadd.f32 %v522_v20, %v321_v32  ;;  %v533_v38 = vpop.f32.mrb[4].mxu1 }
  0xfe   :  { %v193_v39 = vpop.f32.mrb[5].mxu0  ;;  %v225_v40 = vpop.f32.mrb[5].mxu1  ;;  %v348_v55 = vmul.f32 %v525_v36, %v525_v36  ;;  %v356_v15 = vmul.f32 %v533_v38, %v533_v38 }
  0xff   :  { %v323_v41 = vadd.f32 %v322_v37, %v193_v39  ;;  %v346_v42 = vmul.f32 %v193_v39, %v193_v39  ;;  %v360_v43 = vadd.f32 %v359_v35, %v345_v34  ;;  %v526_v44 = vpop.f32.mrb[6].mxu0  ;;  %v534_v45 = vpop.f32.mrb[6].mxu1  ;;  %v354_v9 = vmul.f32 %v225_v40, %v225_v40 }
 0x100   :  { %v458_v46 = vpack.c.bf16 %v526_v44, %v525_v36  ;;  %v196_v47 = vpop.f32.mrb[7].mxu0  ;;  %v478_v48 = vpack.c.bf16 %v534_v45, %v533_v38  ;;  %v228_v49 = vpop.f32.mrb[7].mxu1  ;;  %v349_v58 = vmul.f32 %v526_v44, %v526_v44 }
 0x101   :  { %v361_v50 = vadd.f32 %v360_v43, %v346_v42  ;;  %v453_v51 = vpack.c.bf16 %v196_v47, %v193_v39  ;;  %v324_v52 = vadd.f32 %v323_v41, %v196_v47  ;;  %v347_v53 = vmul.f32 %v196_v47, %v196_v47 }
 0x102   :  { %482 = vst [vmem:[%s672_s2 + $0x18] sm:$0xff] %v458_v46   ;;  %486 = vst [vmem:[%s672_s2 + $0x38] sm:$0xff] %v478_v48   ;;  %v473_v54 = vpack.c.bf16 %v228_v49, %v225_v40  ;;  %v355_v14 = vmul.f32 %v228_v49, %v228_v49 }
 0x103   :  { %481 = vst [vmem:[%s672_s2 + $0x10] sm:$0xff] %v453_v51   ;;  %v325_v56 = vadd.f32 %v525_v36, %v324_v52  ;;  %v362_v57 = vadd.f32 %v361_v50, %v347_v53 }
 0x104   :  { %485 = vst [vmem:[%s672_s2 + $0x30] sm:$0xff] %v473_v54  }
 0x105   :  { %v363_v59 = vadd.f32 %v362_v57, %v348_v55  ;;  %v326_v60 = vadd.f32 %v526_v44, %v325_v56 }
 0x107   :  { %v327_v62 = vadd.f32 %v326_v60, %v209_v19  ;;  %v364_v63 = vadd.f32 %v363_v59, %v349_v58  ;;  %v357_v19 = vmul.f32 %v534_v45, %v534_v45 }
 0x109   :  { %v365_v0 = vadd.f32 %v364_v63, %v350_v61  ;;  %v328_v1 = vadd.f32 %v327_v62, %v212_v26 }
 0x10b   :  { %v329_v4 = vadd.f32 %v529_v17, %v328_v1  ;;  %v366_v5 = vadd.f32 %v365_v0, %v351_v2 }
 0x10d   :  { %v367_v7 = vadd.f32 %v366_v5, %v352_v3  ;;  %v330_v8 = vadd.f32 %v530_v21, %v329_v4 }
 0x10f   :  { %v331_v10 = vadd.f32 %v330_v8, %v225_v40  ;;  %v368_v11 = vadd.f32 %v367_v7, %v353_v6 }
 0x111   :  { %v369_v12 = vadd.f32 %v368_v11, %v354_v9  ;;  %v332_v13 = vadd.f32 %v331_v10, %v228_v49 }
 0x113   :  { %v333_v16 = vadd.f32 %v533_v38, %v332_v13  ;;  %v370_v18 = vadd.f32 %v369_v12, %v355_v14 }
 0x115   :  { %v334_v20 = vadd.f32 %v534_v45, %v333_v16  ;;  %v371_v22 = vadd.f32 %v370_v18, %v356_v15 }
 0x117   :  { %v335_v23 = vrot.slane %v334_v20, 4  ;;  %v372_v24 = vadd.f32 %v371_v22, %v357_v19 }
 0x119   :  { %v336_v25 = vadd.f32 %v335_v23, %v334_v20  ;;  %v373_v17 = vrot.slane %v372_v24, 4 }
 0x11b   :  { %v337_v26 = vrot.slane %v336_v25, 2  ;;  %v374_v27 = vadd.f32 %v373_v17, %v372_v24 }
 0x11d   :  { %v338_v28 = vadd.f32 %v337_v26, %v336_v25  ;;  %v375_v21 = vrot.slane %v374_v27, 2 }
 0x11f   :  { %v339_v29 = vrot.slane %v338_v28, 1  ;;  %v376_v30 = vadd.f32 %v375_v21, %v374_v27 }
 0x121   :  { %v340_v31 = vadd.f32 %v339_v29, %v338_v28  ;;  %v377_v32 = vrot.slane %v376_v30, 1 }
 0x123   :  { %341 = vst [vmem:[%s673_s3] sm:$0x1] %v340_v31  ;;  %v378_v33 = vadd.f32 %v377_v32, %v376_v30 }
 0x125   :  { %379 = vst [vmem:[%s674_s4] sm:$0x1] %v378_v33 }

</bundles_post_ra>
